<compile_context>
chip_gen: v6e
topology: v6e:2x2x1
jax: 0.10.0
libtpu: 0.0.40
codegen_flags: <defaults>
</compile_context>

<pallas_src>
import numpy as np

import jax
import jax.numpy as jnp
from jax.experimental import pallas as pl
from jax.experimental.pallas import tpu as pltpu


def _samples_per_block(n, dh, max_rows=256):
    """Largest divisor nb of n with nb*dh <= max_rows (fills a 256-row MXU pass
    while leaving a >1 grid for v7x's two TensorCores when the batch is big)."""
    best = 1
    for nb in range(1, n + 1):
        if n % nb == 0 and nb * dh <= max_rows:
            best = nb
    return best


def output_mod_forward(x_ndhwc, weight, bias):
    """sigmoid(conv3d_same(x) + bias).  x: NDHWC, weight: (kd,kh,kw,Cin,Cout)."""
    N, D, H, W, Cin = x_ndhwc.shape
    kd, kh, kw, _, Cout = weight.shape
    pd, ph, pw = kd // 2, kh // 2, kw // 2
    Dp, Hp = D + 2 * pd, H + 2 * ph
    WCin, WCout = W * Cin, W * Cout
    K = kd * kh * WCin

    # ---- Banded (block-Toeplitz) weight: fold the kw taps and the W zero
    # padding into one (K, W*Cout) matrix.  Built once from the weights
    # (weight-only work); exact because the selector is 0/1.
    sel = np.zeros((kw, W, W), np.float32)
    for dx in range(kw):
        for w_out in range(W):
            w_src = w_out + dx - pw
            if 0 <= w_src < W:
                sel[dx, w_src, w_out] = 1.0
    wb = jnp.einsum("xsw,dexio->desiwo",
                    jnp.asarray(sel, weight.dtype), weight,
                    precision=jax.lax.Precision.HIGHEST)
    wb = wb.reshape(K, WCout)                     # rows: (dz,dy,w_src,cin)

    # Bias replicated per output-w position so it broadcasts over (M, W*Cout).
    b_tiled = jnp.tile(bias, W).reshape(1, WCout)

    # Free row-major reshape: fold (W, Cin) into the lane dimension.
    x_flat = x_ndhwc.reshape(N, D, H, WCin)

    nb = _samples_per_block(N, D * H)             # samples per grid step
    M = nb * D * H                                # matmul rows per step
    grid = (N // nb,)

    def kernel(x_ref, wb_ref, b_ref, o_ref, xp_ref, lhs_ref):
        # -- In-kernel zero padding of D/H: zero ONLY the halo (the interior is
        # fully overwritten below).  Runs every grid step, so it is correct
        # under "parallel" core sharding (no program_id==0 gating).
        if pd:
            zd = jnp.zeros((nb, pd, Hp, WCin), xp_ref.dtype)
            xp_ref[:, :pd, :, :] = zd
            xp_ref[:, pd + D:, :, :] = zd
        if ph:
            zh = jnp.zeros((nb, D, ph, WCin), xp_ref.dtype)
            xp_ref[:, pd:pd + D, :ph, :] = zh
            xp_ref[:, pd:pd + D, ph + H:, :] = zh
        xp_ref[:, pd:pd + D, ph:ph + H, :] = x_ref[...]

        # -- im2col over the (dz, dy) taps: build one lane-dense LHS so the
        # whole conv is a single (M, K) x (K, W*Cout) MXU matmul.
        for dz in range(kd):
            for dy in range(kh):
                t = dz * kh + dy
                lhs_ref[:, :, :, t * WCin:(t + 1) * WCin] = \
                    xp_ref[:, dz:dz + D, dy:dy + H, :]

        lhs = lhs_ref[...].reshape(M, K)
        acc = jnp.dot(lhs, wb_ref[...], preferred_element_type=jnp.float32)
        acc = acc + b_ref[...].astype(jnp.float32)
        y = 0.5 * jnp.tanh(0.5 * acc) + 0.5       # sigmoid via a single EUP op
        o_ref[...] = y.astype(o_ref.dtype)

    cost = pl.CostEstimate(
        flops=2 * N * D * H * K * WCout,
        transcendentals=N * D * H * WCout,
        bytes_accessed=4 * (N * D * H * WCin + K * WCout + WCout
                            + N * D * H * WCout),
    )

    out = pl.pallas_call(
        kernel,
        out_shape=jax.ShapeDtypeStruct((N * D * H, WCout), x_ndhwc.dtype),
        grid=grid,
        in_specs=[
            pl.BlockSpec((nb, D, H, WCin), lambda i: (i, 0, 0, 0)),
            pl.BlockSpec((K, WCout), lambda i: (0, 0)),
            pl.BlockSpec((1, WCout), lambda i: (0, 0)),
        ],
        out_specs=pl.BlockSpec((M, WCout), lambda i: (i, 0)),
        scratch_shapes=[
            pltpu.VMEM((nb, Dp, Hp, WCin), x_ndhwc.dtype),   # padded input
            pltpu.VMEM((nb, D, H, K), x_ndhwc.dtype),        # im2col LHS
        ],
        compiler_params=pltpu.CompilerParams(
            dimension_semantics=("parallel",)),
        cost_estimate=cost,
    )(x_flat, wb, b_tiled)

    return out.reshape(N, D, H, W, Cout)


# ---------- plain-JAX reference (verification only) ----------
def _ref_forward(x, weight, bias):
    kd, kh, kw = weight.shape[:3]
    pd, ph, pw = kd // 2, kh // 2, kw // 2
    y = jax.lax.conv_general_dilated(
        x, weight, window_strides=(1, 1, 1),
        padding=[(pd, pd), (ph, ph), (pw, pw)],
        dimension_numbers=("NDHWC", "DHWIO", "NDHWC"),
        precision=jax.lax.Precision.HIGHEST)
    return jax.nn.sigmoid(y + bias)


if __name__ == "__main__":
    key = jax.random.PRNGKey(0)
    k_x, k_w, k_b = jax.random.split(key, 3)

    # OutputMod(in_channels=4, out_channels=8, kernel_size=3),
    # input NCDHW = (2, 4, 4, 16, 16)  ->  NDHWC inside.
    N, Cin, Cout, D, H, W = 2, 4, 8, 4, 16, 16
    KS = 3

    x_ncdhw = jax.random.normal(k_x, (N, Cin, D, H, W), jnp.float32)
    x = jnp.transpose(x_ncdhw, (0, 2, 3, 4, 1))          # -> NDHWC

    # MSRA-style (kaiming_normal) weight init; bias small nonzero to exercise it.
    fan_in = Cin * KS * KS * KS
    weight = (jax.random.normal(k_w, (KS, KS, KS, Cin, Cout), jnp.float32)
              * (2.0 / fan_in) ** 0.5)
    bias = jax.random.normal(k_b, (Cout,), jnp.float32) * 0.1

    out = jax.block_until_ready(output_mod_forward(x, weight, bias))
    ref = jax.block_until_ready(_ref_forward(x, weight, bias))

    assert out.shape == (N, D, H, W, Cout)
    assert jnp.allclose(out, ref, rtol=1e-4, atol=1e-4), "mismatch vs reference"

    print("KERNEL_OK")
</pallas_src>

<mosaic_0001>
module attributes {stable_mosaic.version = 11 : i64} {
  func.func @kernel(%arg0: i32, %arg1: memref<2x4x16x64xf32, #tpu.memory_space<vmem>>, %arg2: memref<576x128xf32, #tpu.memory_space<vmem>>, %arg3: memref<1x128xf32, #tpu.memory_space<vmem>>, %arg4: memref<128x128xf32, #tpu.memory_space<vmem>>, %arg5: memref<2x6x18x64xf32, #tpu.memory_space<vmem>>, %arg6: memref<2x4x16x576xf32, #tpu.memory_space<vmem>>) attributes {dimension_semantics = [#tpu.dimension_semantics<parallel>], iteration_bounds = array<i64: 1>, scalar_prefetch = 0 : i64, scratch_operands = 2 : i64, tpu.core_type = #tpu.core_type<tc>, window_params = [{transform_indices = @transform_0, window_bounds = array<i64: 2, 4, 16, 64>}, {pipeline_mode = #tpu.pipeline_mode<synchronous>, transform_indices = @transform_1, window_bounds = array<i64: 576, 128>}, {pipeline_mode = #tpu.pipeline_mode<synchronous>, transform_indices = @transform_2, window_bounds = array<i64: 1, 128>}, {transform_indices = @transform_3, window_bounds = array<i64: 128, 128>}]} {
    %cst = arith.constant 0.000000e+00 : f32
    %0 = vector.broadcast %cst : f32 to vector<2x1x18x64xf32>
    %c0 = arith.constant 0 : index
    %c0_0 = arith.constant 0 : index
    %c0_1 = arith.constant 0 : index
    %c0_2 = arith.constant 0 : index
    %1 = vector.load %arg5[%c0, %c0_0, %c0_1, %c0_2] : memref<2x6x18x64xf32, #tpu.memory_space<vmem>>, vector<2x1x18x64xf32>
    tpu.vector_store %arg5[%c0, %c0_0, %c0_1, %c0_2], %0 {strides = array<i32>} : memref<2x6x18x64xf32, #tpu.memory_space<vmem>>, vector<2x1x18x64xf32>,
    %c0_3 = arith.constant 0 : index
    %c5 = arith.constant 5 : index
    %c0_4 = arith.constant 0 : index
    %c0_5 = arith.constant 0 : index
    %2 = vector.load %arg5[%c0_3, %c5, %c0_4, %c0_5] : memref<2x6x18x64xf32, #tpu.memory_space<vmem>>, vector<2x1x18x64xf32>
    tpu.vector_store %arg5[%c0_3, %c5, %c0_4, %c0_5], %0 {strides = array<i32>} : memref<2x6x18x64xf32, #tpu.memory_space<vmem>>, vector<2x1x18x64xf32>,
    %cst_6 = arith.constant 0.000000e+00 : f32
    %3 = vector.broadcast %cst_6 : f32 to vector<2x4x1x64xf32>
    %c0_7 = arith.constant 0 : index
    %c1 = arith.constant 1 : index
    %c0_8 = arith.constant 0 : index
    %c0_9 = arith.constant 0 : index
    %4 = vector.load %arg5[%c0_7, %c1, %c0_8, %c0_9] : memref<2x6x18x64xf32, #tpu.memory_space<vmem>>, vector<2x4x1x64xf32>
    tpu.vector_store %arg5[%c0_7, %c1, %c0_8, %c0_9], %3 {strides = array<i32>} : memref<2x6x18x64xf32, #tpu.memory_space<vmem>>, vector<2x4x1x64xf32>,
    %c0_10 = arith.constant 0 : index
    %c1_11 = arith.constant 1 : index
    %c17 = arith.constant 17 : index
    %c0_12 = arith.constant 0 : index
    %5 = vector.load %arg5[%c0_10, %c1_11, %c17, %c0_12] : memref<2x6x18x64xf32, #tpu.memory_space<vmem>>, vector<2x4x1x64xf32>
    tpu.vector_store %arg5[%c0_10, %c1_11, %c17, %c0_12], %3 {strides = array<i32>} : memref<2x6x18x64xf32, #tpu.memory_space<vmem>>, vector<2x4x1x64xf32>,
    %c0_13 = arith.constant 0 : index
    %c0_14 = arith.constant 0 : index
    %c0_15 = arith.constant 0 : index
    %c0_16 = arith.constant 0 : index
    %6 = vector.load %arg1[%c0_13, %c0_14, %c0_15, %c0_16] : memref<2x4x16x64xf32, #tpu.memory_space<vmem>>, vector<2x4x16x64xf32>
    %c0_17 = arith.constant 0 : index
    %c1_18 = arith.constant 1 : index
    %c1_19 = arith.constant 1 : index
    %c0_20 = arith.constant 0 : index
    %7 = vector.load %arg5[%c0_17, %c1_18, %c1_19, %c0_20] : memref<2x6x18x64xf32, #tpu.memory_space<vmem>>, vector<2x4x16x64xf32>
    tpu.vector_store %arg5[%c0_17, %c1_18, %c1_19, %c0_20], %6 {strides = array<i32>} : memref<2x6x18x64xf32, #tpu.memory_space<vmem>>, vector<2x4x16x64xf32>,
    %c0_21 = arith.constant 0 : index
    %c0_22 = arith.constant 0 : index
    %c0_23 = arith.constant 0 : index
    %c0_24 = arith.constant 0 : index
    %8 = vector.load %arg5[%c0_21, %c0_22, %c0_23, %c0_24] : memref<2x6x18x64xf32, #tpu.memory_space<vmem>>, vector<2x4x16x64xf32>
    %c0_25 = arith.constant 0 : index
    %c0_26 = arith.constant 0 : index
    %c0_27 = arith.constant 0 : index
    %c0_28 = arith.constant 0 : index
    %9 = vector.load %arg6[%c0_25, %c0_26, %c0_27, %c0_28] : memref<2x4x16x576xf32, #tpu.memory_space<vmem>>, vector<2x4x16x64xf32>
    tpu.vector_store %arg6[%c0_25, %c0_26, %c0_27, %c0_28], %8 {strides = array<i32>} : memref<2x4x16x576xf32, #tpu.memory_space<vmem>>, vector<2x4x16x64xf32>,
    %c0_29 = arith.constant 0 : index
    %c0_30 = arith.constant 0 : index
    %c1_31 = arith.constant 1 : index
    %c0_32 = arith.constant 0 : index
    %10 = vector.load %arg5[%c0_29, %c0_30, %c1_31, %c0_32] : memref<2x6x18x64xf32, #tpu.memory_space<vmem>>, vector<2x4x16x64xf32>
    %c0_33 = arith.constant 0 : index
    %c0_34 = arith.constant 0 : index
    %c0_35 = arith.constant 0 : index
    %c64 = arith.constant 64 : index
    %11 = vector.load %arg6[%c0_33, %c0_34, %c0_35, %c64] : memref<2x4x16x576xf32, #tpu.memory_space<vmem>>, vector<2x4x16x64xf32>
    tpu.vector_store %arg6[%c0_33, %c0_34, %c0_35, %c64], %10 {strides = array<i32>} : memref<2x4x16x576xf32, #tpu.memory_space<vmem>>, vector<2x4x16x64xf32>,
    %c0_36 = arith.constant 0 : index
    %c0_37 = arith.constant 0 : index
    %c2 = arith.constant 2 : index
    %c0_38 = arith.constant 0 : index
    %12 = vector.load %arg5[%c0_36, %c0_37, %c2, %c0_38] : memref<2x6x18x64xf32, #tpu.memory_space<vmem>>, vector<2x4x16x64xf32>
    %c0_39 = arith.constant 0 : index
    %c0_40 = arith.constant 0 : index
    %c0_41 = arith.constant 0 : index
    %c128 = arith.constant 128 : index
    %13 = vector.load %arg6[%c0_39, %c0_40, %c0_41, %c128] : memref<2x4x16x576xf32, #tpu.memory_space<vmem>>, vector<2x4x16x64xf32>
    tpu.vector_store %arg6[%c0_39, %c0_40, %c0_41, %c128], %12 {strides = array<i32>} : memref<2x4x16x576xf32, #tpu.memory_space<vmem>>, vector<2x4x16x64xf32>,
    %c0_42 = arith.constant 0 : index
    %c1_43 = arith.constant 1 : index
    %c0_44 = arith.constant 0 : index
    %c0_45 = arith.constant 0 : index
    %14 = vector.load %arg5[%c0_42, %c1_43, %c0_44, %c0_45] : memref<2x6x18x64xf32, #tpu.memory_space<vmem>>, vector<2x4x16x64xf32>
    %c0_46 = arith.constant 0 : index
    %c0_47 = arith.constant 0 : index
    %c0_48 = arith.constant 0 : index
    %c192 = arith.constant 192 : index
    %15 = vector.load %arg6[%c0_46, %c0_47, %c0_48, %c192] : memref<2x4x16x576xf32, #tpu.memory_space<vmem>>, vector<2x4x16x64xf32>
    tpu.vector_store %arg6[%c0_46, %c0_47, %c0_48, %c192], %14 {strides = array<i32>} : memref<2x4x16x576xf32, #tpu.memory_space<vmem>>, vector<2x4x16x64xf32>,
    %c0_49 = arith.constant 0 : index
    %c1_50 = arith.constant 1 : index
    %c1_51 = arith.constant 1 : index
    %c0_52 = arith.constant 0 : index
    %16 = vector.load %arg5[%c0_49, %c1_50, %c1_51, %c0_52] : memref<2x6x18x64xf32, #tpu.memory_space<vmem>>, vector<2x4x16x64xf32>
    %c0_53 = arith.constant 0 : index
    %c0_54 = arith.constant 0 : index
    %c0_55 = arith.constant 0 : index
    %c256 = arith.constant 256 : index
    %17 = vector.load %arg6[%c0_53, %c0_54, %c0_55, %c256] : memref<2x4x16x576xf32, #tpu.memory_space<vmem>>, vector<2x4x16x64xf32>
    tpu.vector_store %arg6[%c0_53, %c0_54, %c0_55, %c256], %16 {strides = array<i32>} : memref<2x4x16x576xf32, #tpu.memory_space<vmem>>, vector<2x4x16x64xf32>,
    %c0_56 = arith.constant 0 : index
    %c1_57 = arith.constant 1 : index
    %c2_58 = arith.constant 2 : index
    %c0_59 = arith.constant 0 : index
    %18 = vector.load %arg5[%c0_56, %c1_57, %c2_58, %c0_59] : memref<2x6x18x64xf32, #tpu.memory_space<vmem>>, vector<2x4x16x64xf32>
    %c0_60 = arith.constant 0 : index
    %c0_61 = arith.constant 0 : index
    %c0_62 = arith.constant 0 : index
    %c320 = arith.constant 320 : index
    %19 = vector.load %arg6[%c0_60, %c0_61, %c0_62, %c320] : memref<2x4x16x576xf32, #tpu.memory_space<vmem>>, vector<2x4x16x64xf32>
    tpu.vector_store %arg6[%c0_60, %c0_61, %c0_62, %c320], %18 {strides = array<i32>} : memref<2x4x16x576xf32, #tpu.memory_space<vmem>>, vector<2x4x16x64xf32>,
    %c0_63 = arith.constant 0 : index
    %c2_64 = arith.constant 2 : index
    %c0_65 = arith.constant 0 : index
    %c0_66 = arith.constant 0 : index
    %20 = vector.load %arg5[%c0_63, %c2_64, %c0_65, %c0_66] : memref<2x6x18x64xf32, #tpu.memory_space<vmem>>, vector<2x4x16x64xf32>
    %c0_67 = arith.constant 0 : index
    %c0_68 = arith.constant 0 : index
    %c0_69 = arith.constant 0 : index
    %c384 = arith.constant 384 : index
    %21 = vector.load %arg6[%c0_67, %c0_68, %c0_69, %c384] : memref<2x4x16x576xf32, #tpu.memory_space<vmem>>, vector<2x4x16x64xf32>
    tpu.vector_store %arg6[%c0_67, %c0_68, %c0_69, %c384], %20 {strides = array<i32>} : memref<2x4x16x576xf32, #tpu.memory_space<vmem>>, vector<2x4x16x64xf32>,
    %c0_70 = arith.constant 0 : index
    %c2_71 = arith.constant 2 : index
    %c1_72 = arith.constant 1 : index
    %c0_73 = arith.constant 0 : index
    %22 = vector.load %arg5[%c0_70, %c2_71, %c1_72, %c0_73] : memref<2x6x18x64xf32, #tpu.memory_space<vmem>>, vector<2x4x16x64xf32>
    %c0_74 = arith.constant 0 : index
    %c0_75 = arith.constant 0 : index
    %c0_76 = arith.constant 0 : index
    %c448 = arith.constant 448 : index
    %23 = vector.load %arg6[%c0_74, %c0_75, %c0_76, %c448] : memref<2x4x16x576xf32, #tpu.memory_space<vmem>>, vector<2x4x16x64xf32>
    tpu.vector_store %arg6[%c0_74, %c0_75, %c0_76, %c448], %22 {strides = array<i32>} : memref<2x4x16x576xf32, #tpu.memory_space<vmem>>, vector<2x4x16x64xf32>,
    %c0_77 = arith.constant 0 : index
    %c2_78 = arith.constant 2 : index
    %c2_79 = arith.constant 2 : index
    %c0_80 = arith.constant 0 : index
    %24 = vector.load %arg5[%c0_77, %c2_78, %c2_79, %c0_80] : memref<2x6x18x64xf32, #tpu.memory_space<vmem>>, vector<2x4x16x64xf32>
    %c0_81 = arith.constant 0 : index
    %c0_82 = arith.constant 0 : index
    %c0_83 = arith.constant 0 : index
    %c512 = arith.constant 512 : index
    %25 = vector.load %arg6[%c0_81, %c0_82, %c0_83, %c512] : memref<2x4x16x576xf32, #tpu.memory_space<vmem>>, vector<2x4x16x64xf32>
    tpu.vector_store %arg6[%c0_81, %c0_82, %c0_83, %c512], %24 {strides = array<i32>} : memref<2x4x16x576xf32, #tpu.memory_space<vmem>>, vector<2x4x16x64xf32>,
    %c0_84 = arith.constant 0 : index
    %c0_85 = arith.constant 0 : index
    %c0_86 = arith.constant 0 : index
    %c0_87 = arith.constant 0 : index
    %26 = vector.load %arg6[%c0_84, %c0_85, %c0_86, %c0_87] : memref<2x4x16x576xf32, #tpu.memory_space<vmem>>, vector<2x4x16x576xf32>
    %27 = vector.shape_cast %26 : vector<2x4x16x576xf32> to vector<128x576xf32>
    %c0_88 = arith.constant 0 : index
    %c0_89 = arith.constant 0 : index
    %28 = vector.load %arg2[%c0_88, %c0_89] : memref<576x128xf32, #tpu.memory_space<vmem>>, vector<576x128xf32>
    %cst_90 = arith.constant dense<0.000000e+00> : vector<128x128xf32>
    %29 = tpu.matmul %27, %28, %cst_90 {dimension_numbers = #tpu.dot_dimension_numbers<[1], [0], [0], [1], [0, 0, 1, 1], [], []>} : vector<128x576xf32>, vector<576x128xf32>, vector<128x128xf32> -> vector<128x128xf32>
    %c0_91 = arith.constant 0 : index
    %c0_92 = arith.constant 0 : index
    %30 = vector.load %arg3[%c0_91, %c0_92] : memref<1x128xf32, #tpu.memory_space<vmem>>, vector<1x128xf32>
    %31 = vector.broadcast %30 : vector<1x128xf32> to vector<128x128xf32>
    %32 = arith.addf %29, %31 : vector<128x128xf32>
    %cst_93 = arith.constant 5.000000e-01 : f32
    %33 = vector.broadcast %cst_93 : f32 to vector<128x128xf32>
    %34 = arith.mulf %33, %32 : vector<128x128xf32>
    %35 = math.tanh %34 : vector<128x128xf32>
    %cst_94 = arith.constant 5.000000e-01 : f32
    %36 = vector.broadcast %cst_94 : f32 to vector<128x128xf32>
    %37 = arith.mulf %36, %35 : vector<128x128xf32>
    %cst_95 = arith.constant 5.000000e-01 : f32
    %38 = vector.broadcast %cst_95 : f32 to vector<128x128xf32>
    %39 = arith.addf %37, %38 : vector<128x128xf32>
    %c0_96 = arith.constant 0 : index
    %c0_97 = arith.constant 0 : index
    %40 = vector.load %arg4[%c0_96, %c0_97] : memref<128x128xf32, #tpu.memory_space<vmem>>, vector<128x128xf32>
    tpu.vector_store %arg4[%c0_96, %c0_97], %39 {strides = array<i32>} : memref<128x128xf32, #tpu.memory_space<vmem>>, vector<128x128xf32>,
    return
  }
  func.func @transform_0(%arg0: i32) -> (i32, i32, i32, i32) {
    %c0_i32 = arith.constant 0 : i32
    %c0_i32_0 = arith.constant 0 : i32
    %c0_i32_1 = arith.constant 0 : i32
    %c0_i32_2 = arith.constant 0 : i32
    return %arg0, %c0_i32, %c0_i32_0, %c0_i32_1 : i32, i32, i32, i32
  }
  func.func @transform_1(%arg0: i32) -> (i32, i32) {
    %c0_i32 = arith.constant 0 : i32
    %c0_i32_0 = arith.constant 0 : i32
    %c0_i32_1 = arith.constant 0 : i32
    return %c0_i32, %c0_i32_0 : i32, i32
  }
  func.func @transform_2(%arg0: i32) -> (i32, i32) {
    %c0_i32 = arith.constant 0 : i32
    %c0_i32_0 = arith.constant 0 : i32
    %c0_i32_1 = arith.constant 0 : i32
    return %c0_i32, %c0_i32_0 : i32, i32
  }
  func.func @transform_3(%arg0: i32) -> (i32, i32) {
    %c0_i32 = arith.constant 0 : i32
    %c0_i32_0 = arith.constant 0 : i32
    return %arg0, %c0_i32 : i32, i32
  }
}

</mosaic_0001>

<bundles_post_ra>
// kernel: tpu_custom_call.1
= control target key start
LH: loop header
LB: loop body
LE: loop exit
PB: predicated region body
PF: predicated region fallthrough
CT: control target
= control target key end

     0   :  { %8 = vsyncpa [#allocation5], 0  ;;  %s2335_s0 = inlined_call_operand.hbm [shape: f32[2,4,16,64], index: 0, kind: input, shape index: {}]   ;;  %s2336_s1 = inlined_call_operand.hbm [shape: f32[576,128], index: 1, kind: input, shape index: {}]   ;;  %s2337_s2 = inlined_call_operand.vmem [shape: f32[1,128], index: 2, kind: input, shape index: {}]   ;;  %s2338_s3 = inlined_call_operand.hbm [shape: f32[128,128], index: 3, kind: output, shape index: {}]  }
   0x1   :  { %9 = vsyncpa [#allocation8], 0 }
   0x2   :  { %10 = vsyncpa [#allocation6], 0  ;;  %s1756_s12 = smov [#allocation4]  }
   0x3   :  { %s16_s13 = sshll.u32 %s1756_s12, 4  ;;  %s17_s13 = int_to_ptr.vmem [resolvable:$true] %s16_s13 }
   0x4   :  { %s1698_s14 = scalar_lea.vmem %s17_s13, 2048  ;;  %p1703_p1 = scmp.lt.s32.totalorder %s17_s13, %s17_s13 }
   0x5   :  { %p1699_p0 = scmp.ne.s32.totalorder %s17_s13, %s1698_s14  ;;  %p1704_p2 = scmp.lt.s32.totalorder %s1698_s14, %s1698_s14 }
   0x7   :  { %p1705_p3 = por %p1704_p2, %p1703_p1 }
   0x9   :  { %p1706_p4 = pnand %p1705_p3, %p1699_p0 }
   0xb   :  { %1709 = shalt.err (!%p1706_p4)
}
   0xc   :  { %s1757_s15 = smov 128   ;;  %s1758_s16 = smov 8  }
   0xd   :  { %22 = dma.hbm_to_vmem [thread:$0]  %s2335_s0, 2048, %s17_s13, [#allocation5], %s1757_s15, %s1757_s15, %s1758_s16  }
   0xe   :  { %s1759_s19 = smov [#allocation7]  }
   0xf   :  { %s28_s20 = sshll.u32 %s1759_s19, 4  ;;  %s29_s20 = int_to_ptr.vmem [resolvable:$true] %s28_s20 }
  0x10   :  { %s1718_s21 = scalar_lea.vmem %s29_s20, 9216  ;;  %p1723_p6 = scmp.lt.s32.totalorder %s29_s20, %s29_s20 }
  0x11   :  { %p1719_p5 = scmp.ne.s32.totalorder %s29_s20, %s1718_s21  ;;  %p1724_p7 = scmp.lt.s32.totalorder %s1718_s21, %s1718_s21 }
  0x13   :  { %p1725_p8 = por %p1724_p7, %p1723_p6 }
  0x15   :  { %p1726_p9 = pnand %p1725_p8, %p1719_p5 }
  0x17   :  { %1729 = shalt.err (!%p1726_p9)
}
  0x18   :  { %34 = dma.hbm_to_vmem [thread:$0]  %s2336_s1, 9216, %s29_s20, [#allocation8], %s1757_s15, %s1757_s15, %s1758_s16  }
  0x19   :  { %1750 = dma.done.wait [#allocation5], 2048  }
  0x1a   :  { %1751 = vsyncadd [#allocation5], 4294965248 }
  0x1b   :  { %1752 = dma.done.wait [#allocation8], 9216  }
  0x1c   :  { %1753 = vsyncadd [#allocation8], 4294958080  ;;  %vm43_vm0 = vcmask 523264   ;;  %vm46_vm1 = vcmask 517120   ;;  %v1760_v0 = vmov 0.0   ;;  %vm59_vm2 = vcmask 516096  }
  0x1d   :  { %45 = vst.msk [vmem:[#allocation2 + $0x8] sm:$0xff] %vm43_vm0, %v1760_v0  ;;  %44 = vst.msk [vmem:[#allocation2] sm:$0xff] %vm43_vm0, %v1760_v0  ;;  %v76_v1 = vld [vmem:[#allocation4] sm:$0xff]  ;;  %v77_v2 = vld [vmem:[#allocation4 + $0x8] sm:$0xff]  ;;  %s1761_s0 = smov 64   ;;  %vm220_vm3 = vcmask 1048064  }
  0x1e   :  { %47 = vst.msk [vmem:[#allocation2 + $0x10] sm:$0x3] %vm46_vm1, %v1760_v0  ;;  %50 = vst.msk [vmem:[#allocation2 + $0xa0] sm:$0x3] %vm46_vm1, %v1760_v0  ;;  %v78_v3 = vld [vmem:[#allocation4 + $0x10] sm:$0xff]  ;;  %v79_v6 = vld [vmem:[#allocation4 + $0x18] sm:$0xff] }
  0x1f   :  { %48 = vst.msk [vmem:[#allocation2 + $0x90] sm:$0xff] %vm43_vm0, %v1760_v0  ;;  %49 = vst.msk [vmem:[#allocation2 + $0x98] sm:$0xff] %vm43_vm0, %v1760_v0  ;;  %v80_v7 = vld [vmem:[#allocation4 + $0x20] sm:$0xff]  ;;  %v81_v8 = vld [vmem:[#allocation4 + $0x28] sm:$0xff] }
  0x20   :  { %52 = vst.msk [vmem:[#allocation2 + $0x78] sm:$0xff] %vm43_vm0, %v1760_v0  ;;  %53 = vst.msk [vmem:[#allocation2 + $0x80] sm:$0xff] %vm43_vm0, %v1760_v0  ;;  %v82_v9 = vld [vmem:[#allocation4 + $0x30] sm:$0xff]  ;;  %v83_v10 = vld [vmem:[#allocation4 + $0x38] sm:$0xff] }
  0x21   :  { %54 = vst.msk [vmem:[#allocation2 + $0x88] sm:$0x3] %vm46_vm1, %v1760_v0  ;;  %57 = vst.msk [vmem:[#allocation2 + $0x118] sm:$0x3] %vm46_vm1, %v1760_v0  ;;  %v84_v11 = vld [vmem:[#allocation4 + $0x40] sm:$0xff]  ;;  %v86_v12 = vld [vmem:[#allocation4 + $0x50] sm:$0xff] }
  0x22   :  { %55 = vst.msk [vmem:[#allocation2 + $0x108] sm:$0xff] %vm43_vm0, %v1760_v0  ;;  %56 = vst.msk [vmem:[#allocation2 + $0x110] sm:$0xff] %vm43_vm0, %v1760_v0  ;;  %v85_v13 = vld [vmem:[#allocation4 + $0x48] sm:$0xff]  ;;  %v87_v14 = vld [vmem:[#allocation4 + $0x58] sm:$0xff] }
  0x23   :  { %60 = vst.msk [vmem:[#allocation2 + $0x18] sm:$0x1] %vm59_vm2, %v1760_v0  ;;  %61 = vst.msk [vmem:[#allocation2 + $0x30] sm:$0x1] %vm59_vm2, %v1760_v0  ;;  %v88_v15 = vld [vmem:[#allocation4 + $0x60] sm:$0xff]  ;;  %v89_v16 = vld [vmem:[#allocation4 + $0x68] sm:$0xff] }
  0x24   :  { %62 = vst.msk [vmem:[#allocation2 + $0x48] sm:$0x1] %vm59_vm2, %v1760_v0  ;;  %63 = vst.msk [vmem:[#allocation2 + $0x60] sm:$0x1] %vm59_vm2, %v1760_v0  ;;  %v140_v5 = vld [vmem:[#allocation2 + $0x1] sm:$0xff]  ;;  %v765_v17 = vld [vmem:[#allocation7 + $0xf8] sm:$0xff] }
  0x25   :  { %64 = vst.msk [vmem:[#allocation2 + $0xa8] sm:$0x1] %vm59_vm2, %v1760_v0  ;;  %65 = vst.msk [vmem:[#allocation2 + $0xc0] sm:$0x1] %vm59_vm2, %v1760_v0  ;;  %v141_v4 = vld [vmem:[#allocation2 + $0x9] sm:$0xff]  ;;  %172 = vrot.lane.b32.xlu1 %v140_v5, %s1761_s0  ;;  %1411 = vmatprep.subr.mxu0 %v765_v17  ;;  %v749_v19 = vld [vmem:[#allocation7 + $0x78] sm:$0xff] }
  0x26   :  { %66 = vst.msk [vmem:[#allocation2 + $0xd8] sm:$0x1] %vm59_vm2, %v1760_v0  ;;  %67 = vst.msk [vmem:[#allocation2 + $0xf0] sm:$0x1] %vm59_vm2, %v1760_v0  ;;  %174 = vrot.lane.b32.xlu0 %v141_v4, %s1761_s0  ;;  %v90_v18 = vld [vmem:[#allocation4 + $0x70] sm:$0xff]  ;;  %1412 = vmatpush3.msra.mxu0 %v749_v19  ;;  %v763_v58 = vld [vmem:[#allocation7 + $0xe8] sm:$0xff] }
  0x27   :  { %68 = vst.msk [vmem:[#allocation2 + $0x29] sm:$0x1] %vm59_vm2, %v1760_v0  ;;  %69 = vst.msk [vmem:[#allocation2 + $0x41] sm:$0x1] %vm59_vm2, %v1760_v0  ;;  %v764_v20 = vld [vmem:[#allocation7 + $0xf0] sm:$0xff]  ;;  %v797_v59 = vld [vmem:[#allocation7 + $0x1f8] sm:$0xff] }
  0x28   :  { %70 = vst.msk [vmem:[#allocation2 + $0x59] sm:$0x1] %vm59_vm2, %v1760_v0  ;;  %71 = vst.msk [vmem:[#allocation2 + $0x71] sm:$0x1] %vm59_vm2, %v1760_v0  ;;  %1413 = vmatprep.subr.mxu0 %v764_v20  ;;  %v748_v57 = vld [vmem:[#allocation7 + $0x70] sm:$0xff]  ;;  %v747_v61 = vld [vmem:[#allocation7 + $0x68] sm:$0xff]  ;;  %1491 = vmatprep.subr.mxu1 %v797_v59 }
  0x29   :  { %72 = vst.msk [vmem:[#allocation2 + $0xb9] sm:$0x1] %vm59_vm2, %v1760_v0  ;;  %73 = vst.msk [vmem:[#allocation2 + $0xd1] sm:$0x1] %vm59_vm2, %v1760_v0  ;;  %1414 = vmatpush3.msra.mxu0 %v748_v57  ;;  %v781_v62 = vld [vmem:[#allocation7 + $0x178] sm:$0xff]  ;;  %v762_v63 = vld [vmem:[#allocation7 + $0xe0] sm:$0xff] }
  0x2a   :  { %74 = vst.msk [vmem:[#allocation2 + $0xe9] sm:$0x1] %vm59_vm2, %v1760_v0  ;;  %75 = vst.msk [vmem:[#allocation2 + $0x101] sm:$0x1] %vm59_vm2, %v1760_v0  ;;  %1415 = vmatprep.subr.mxu0 %v763_v58  ;;  %v796_v0 = vld [vmem:[#allocation7 + $0x1f0] sm:$0xff]  ;;  %1492 = vmatpush3.msra.mxu1 %v781_v62  ;;  %v795_v4 = vld [vmem:[#allocation7 + $0x1e8] sm:$0xff] }
  0x2b   :  { %92 = vst.msk [vmem:[#allocation2 + $0x19] sm:$0xff] %vm43_vm0, %v76_v1  ;;  %93 = vst.msk [vmem:[#allocation2 + $0x21] sm:$0xff] %vm43_vm0, %v77_v2  ;;  %1416 = vmatpush3.msra.mxu0 %v747_v61  ;;  %v746_v1 = vld [vmem:[#allocation7 + $0x60] sm:$0xff]  ;;  %v780_v2 = vld [vmem:[#allocation7 + $0x170] sm:$0xff]  ;;  %1493 = vmatprep.subr.mxu1 %v796_v0 }
  0x2c   :  { %94 = vst.msk [vmem:[#allocation2 + $0x31] sm:$0xff] %vm43_vm0, %v78_v3  ;;  %95 = vst.msk [vmem:[#allocation2 + $0x39] sm:$0xff] %vm43_vm0, %v79_v6  ;;  %v761_v3 = vld [vmem:[#allocation7 + $0xd8] sm:$0xff]  ;;  %1417 = vmatprep.subr.mxu0 %v762_v63  ;;  %1494 = vmatpush3.msra.mxu1 %v780_v2  ;;  %v743_v17 = vld [vmem:[#allocation7 + $0x48] sm:$0xff] }
  0x2d   :  { %96 = vst.msk [vmem:[#allocation2 + $0x49] sm:$0xff] %vm43_vm0, %v80_v7  ;;  %97 = vst.msk [vmem:[#allocation2 + $0x51] sm:$0xff] %vm43_vm0, %v81_v8  ;;  %v91_v6 = vld [vmem:[#allocation4 + $0x78] sm:$0xff]  ;;  %1418 = vmatpush3.msra.mxu0 %v746_v1  ;;  %v779_v8 = vld [vmem:[#allocation7 + $0x168] sm:$0xff]  ;;  %1495 = vmatprep.subr.mxu1 %v795_v4 }
  0x2e   :  { %98 = vst.msk [vmem:[#allocation2 + $0x61] sm:$0xff] %vm43_vm0, %v82_v9  ;;  %99 = vst.msk [vmem:[#allocation2 + $0x69] sm:$0xff] %vm43_vm0, %v83_v10  ;;  %v745_v7 = vld [vmem:[#allocation7 + $0x58] sm:$0xff]  ;;  %1419 = vmatprep.subr.mxu0 %v761_v3  ;;  %v760_v9 = vld [vmem:[#allocation7 + $0xd0] sm:$0xff]  ;;  %1496 = vmatpush3.msra.mxu1 %v779_v8 }
  0x2f   :  { %100 = vst.msk [vmem:[#allocation2 + $0xa9] sm:$0xff] %vm43_vm0, %v84_v11  ;;  %102 = vst.msk [vmem:[#allocation2 + $0xc1] sm:$0xff] %vm43_vm0, %v86_v12  ;;  %v794_v10 = vld [vmem:[#allocation7 + $0x1e0] sm:$0xff]  ;;  %v744_v12 = vld [vmem:[#allocation7 + $0x50] sm:$0xff]  ;;  %1420 = vmatpush3.msra.mxu0 %v745_v7 }
  0x30   :  { %101 = vst.msk [vmem:[#allocation2 + $0xb1] sm:$0xff] %vm43_vm0, %v85_v13  ;;  %103 = vst.msk [vmem:[#allocation2 + $0xc9] sm:$0xff] %vm43_vm0, %v87_v14  ;;  %v778_v13 = vld [vmem:[#allocation7 + $0x160] sm:$0xff]  ;;  %1421 = vmatprep.subr.mxu0 %v760_v9  ;;  %1497 = vmatprep.subr.mxu1 %v794_v10  ;;  %v759_v14 = vld [vmem:[#allocation7 + $0xc8] sm:$0xff] }
  0x31   :  { %104 = vst.msk [vmem:[#allocation2 + $0xd9] sm:$0xff] %vm43_vm0, %v88_v15  ;;  %105 = vst.msk [vmem:[#allocation2 + $0xe1] sm:$0xff] %vm43_vm0, %v89_v16  ;;  %v793_v15 = vld [vmem:[#allocation7 + $0x1d8] sm:$0xff]  ;;  %1422 = vmatpush3.msra.mxu0 %v744_v12  ;;  %1498 = vmatpush3.msra.mxu1 %v778_v13  ;;  %v758_v19 = vld [vmem:[#allocation7 + $0xc0] sm:$0xff] }
  0x32   :  { %v269_v21 = vld [vmem:[#allocation2 + $0x18] sm:$0xff]  ;;  %106 = vst.msk [vmem:[#allocation2 + $0xf1] sm:$0xff] %vm43_vm0, %v90_v18  ;;  %v270_v25 = vld [vmem:[#allocation2 + $0x20] sm:$0xff]  ;;  %107 = vst.msk [vmem:[#allocation2 + $0xf9] sm:$0xff] %vm43_vm0, %v91_v6  ;;  %1423 = vmatprep.subr.mxu0 %v759_v14  ;;  %1499 = vmatprep.subr.mxu1 %v793_v15 }
  0x33   :  { %v397_v22 = vld [vmem:[#allocation2 + $0x1a] sm:$0xff]  ;;  %v1835_v23 = vld [vmem:[#allocation2 + $0x31] sm:$0xff]  ;;  %301 = vrot.lane.b32.xlu0 %v269_v21, %s1761_s0  ;;  %v398_v26 = vld [vmem:[#allocation2 + $0x22] sm:$0xff]  ;;  %126 = vst.msk [vmem:[#allocation3 + $0x50] sm:$0xff] %vm43_vm0, %v269_v21  ;;  %1424 = vmatpush3.msra.mxu0 %v743_v17 }
  0x34   :  { %429 = vrot.lane.b32.xlu1 %v397_v22, %s1761_s0  ;;  %v1840_v24 = vld [vmem:[#allocation2 + $0x39] sm:$0xff]  ;;  %255 = vst.msk [vmem:[#allocation3 + $0x58] sm:$0xff] %vm43_vm0, %v397_v22  ;;  %383 = vst.msk [vmem:[#allocation3 + $0x60] sm:$0xff] %vm43_vm0, %v1835_v23  ;;  %v1846_v27 = vld [vmem:[#allocation2 + $0x30] sm:$0xff]  ;;  %1425 = vmatprep.subr.mxu0 %v758_v19 }
  0x35   :  { %v1848_v28 = vld [vmem:[#allocation2 + $0x49] sm:$0xff]  ;;  %v1850_v29 = vld [vmem:[#allocation2 + $0x19] sm:$0xff]  ;;  %256 = vst.msk [vmem:[#allocation3 + $0x80] sm:$0xff] %vm43_vm0, %v398_v26  ;;  %127 = vst.msk [vmem:[#allocation3 + $0x78] sm:$0xff] %vm43_vm0, %v270_v25 }
  0x36   :  { %384 = vst.msk [vmem:[#allocation3 + $0x88] sm:$0xff] %vm43_vm0, %v1840_v24  ;;  %v1856_v30 = vld [vmem:[#allocation2 + $0x32] sm:$0xff]  ;;  %381 = vst.msk [vmem:[#allocation3 + $0x10] sm:$0xff] %vm43_vm0, %v1850_v29  ;;  %v1870_v33 = vld [vmem:[#allocation2 + $0x21] sm:$0xff] }
  0x37   :  { %v1858_v31 = vld [vmem:[#allocation2 + $0x38] sm:$0xff]  ;;  %510 = vst.msk [vmem:[#allocation3 + $0x18] sm:$0xff] %vm43_vm0, %v1846_v27  ;;  %128 = vst.msk [vmem:[#allocation3 + $0xa0] sm:$0xff] %vm43_vm0, %v1846_v27  ;;  %v1874_v35 = vld [vmem:[#allocation2 + $0x48] sm:$0xff]  ;;  %558 = vrot.lane.b32.xlu0 %v1835_v23, %s1761_s0 }
  0x38   :  { %v1860_v32 = vld [vmem:[#allocation2 + $0x51] sm:$0xff]  ;;  %385 = vst.msk [vmem:[#allocation3 + $0xb0] sm:$0xff] %vm43_vm0, %v1848_v28  ;;  %v1872_v34 = vld [vmem:[#allocation2 + $0x3a] sm:$0xff]  ;;  %511 = vst.msk [vmem:[#allocation3 + $0x40] sm:$0xff] %vm43_vm0, %v1858_v31  ;;  %560 = vrot.lane.b32.xlu1 %v1840_v24, %s1761_s0 }
  0x39   :  { %257 = vst.msk [vmem:[#allocation3 + $0xa8] sm:$0xff] %vm43_vm0, %v1856_v30  ;;  %129 = vst.msk [vmem:[#allocation3 + $0xc8] sm:$0xff] %vm43_vm0, %v1858_v31  ;;  %v1888_v36 = vld [vmem:[#allocation2 + $0x61] sm:$0xff]  ;;  %v1890_v37 = vld [vmem:[#allocation2 + $0x4a] sm:$0xff] }
  0x3a   :  { %386 = vst.msk [vmem:[#allocation3 + $0xd8] sm:$0xff] %vm43_vm0, %v1860_v32  ;;  %v1892_v38 = vld [vmem:[#allocation2 + $0x50] sm:$0xff]  ;;  %382 = vst.msk [vmem:[#allocation3 + $0x38] sm:$0xff] %vm43_vm0, %v1870_v33  ;;  %v1906_v41 = vld [vmem:[#allocation2 + $0x60] sm:$0xff] }
  0x3b   :  { %512 = vst.msk [vmem:[#allocation3 + $0x68] sm:$0xff] %vm43_vm0, %v1874_v35  ;;  %258 = vst.msk [vmem:[#allocation3 + $0xd0] sm:$0xff] %vm43_vm0, %v1872_v34  ;;  %v1902_v39 = vld [vmem:[#allocation2 + $0x69] sm:$0xff]  ;;  %v1904_v40 = vld [vmem:[#allocation2 + $0x52] sm:$0xff]  ;;  %303 = vrot.lane.b32.xlu0 %v270_v25, %s1761_s0 }
  0x3c   :  { %130 = vst.msk [vmem:[#allocation3 + $0xf0] sm:$0xff] %vm43_vm0, %v1874_v35  ;;  %513 = vst.msk [vmem:[#allocation3 + $0x90] sm:$0xff] %vm43_vm0, %v1892_v38  ;;  %v1916_v42 = vld [vmem:[#allocation2 + $0x68] sm:$0xff]  ;;  %431 = vrot.lane.b32.xlu1 %v398_v26, %s1761_s0  ;;  %v1934_v46 = vld [vmem:[#allocation2 + $0xb0] sm:$0xff] }
  0x3d   :  { %259 = vst.msk [vmem:[#allocation3 + $0xf8] sm:$0xff] %vm43_vm0, %v1890_v37  ;;  %387 = vst.msk [vmem:[#allocation3 + $0x100] sm:$0xff] %vm43_vm0, %v1888_v36  ;;  %v1924_v43 = vld [vmem:[#allocation2 + $0xa8] sm:$0xff]  ;;  %v1938_v48 = vld [vmem:[#allocation2 + $0xb2] sm:$0xff] }
  0x3e   :  { %131 = vst.msk [vmem:[#allocation3 + $0x118] sm:$0xff] %vm43_vm0, %v1892_v38  ;;  %514 = vst.msk [vmem:[#allocation3 + $0xb8] sm:$0xff] %vm43_vm0, %v1906_v41  ;;  %v1926_v44 = vld [vmem:[#allocation2 + $0xc1] sm:$0xff]  ;;  %v1928_v45 = vld [vmem:[#allocation2 + $0xaa] sm:$0xff] }
  0x3f   :  { %260 = vst.msk [vmem:[#allocation3 + $0x120] sm:$0xff] %vm43_vm0, %v1904_v40  ;;  %388 = vst.msk [vmem:[#allocation3 + $0x128] sm:$0xff] %vm43_vm0, %v1902_v39  ;;  %v1936_v47 = vld [vmem:[#allocation2 + $0xc9] sm:$0xff]  ;;  %v1946_v49 = vld [vmem:[#allocation2 + $0xc0] sm:$0xff]  ;;  %305 = vrot.lane.b32.xlu0 %v1846_v27, %s1761_s0 }
  0x40   :  { %515 = vst.msk [vmem:[#allocation3 + $0xe0] sm:$0xff] %vm43_vm0, %v1916_v42  ;;  %263 = vst.msk [vmem:[#allocation3 + $0x198] sm:$0xff] %vm43_vm0, %v1928_v45  ;;  %v1948_v50 = vld [vmem:[#allocation2 + $0xd9] sm:$0xff]  ;;  %v1950_v51 = vld [vmem:[#allocation2 + $0xa9] sm:$0xff]  ;;  %562 = vrot.lane.b32.xlu1 %v1848_v28, %s1761_s0 }
  0x41   :  { %134 = vst.msk [vmem:[#allocation3 + $0x190] sm:$0xff] %vm43_vm0, %v1924_v43  ;;  %391 = vst.msk [vmem:[#allocation3 + $0x1a0] sm:$0xff] %vm43_vm0, %v1926_v44  ;;  %v1958_v52 = vld [vmem:[#allocation2 + $0xc2] sm:$0xff]  ;;  %v1970_v54 = vld [vmem:[#allocation2 + $0xb1] sm:$0xff] }
  0x42   :  { %264 = vst.msk [vmem:[#allocation3 + $0x1c0] sm:$0xff] %vm43_vm0, %v1938_v48  ;;  %135 = vst.msk [vmem:[#allocation3 + $0x1b8] sm:$0xff] %vm43_vm0, %v1934_v46  ;;  %v1960_v53 = vld [vmem:[#allocation2 + $0xc8] sm:$0xff]  ;;  %v1974_v56 = vld [vmem:[#allocation2 + $0xd8] sm:$0xff] }
  0x43   :  { %392 = vst.msk [vmem:[#allocation3 + $0x1c8] sm:$0xff] %vm43_vm0, %v1936_v47  ;;  %518 = vst.msk [vmem:[#allocation3 + $0x158] sm:$0xff] %vm43_vm0, %v1946_v49  ;;  %v1972_v55 = vld [vmem:[#allocation2 + $0xca] sm:$0xff]  ;;  %v1990_v60 = vld [vmem:[#allocation2 + $0xda] sm:$0xff]  ;;  %176 = vrot.lane.b32.xlu0 %v1850_v29, %s1761_s0 }
  0x44   :  { %389 = vst.msk [vmem:[#allocation3 + $0x150] sm:$0xff] %vm43_vm0, %v1950_v51  ;;  %136 = vst.msk [vmem:[#allocation3 + $0x1e0] sm:$0xff] %vm43_vm0, %v1946_v49  ;;  %433 = vrot.lane.b32.xlu1 %v1856_v30, %s1761_s0  ;;  %v1998_v5 = vld [vmem:[#allocation2 + $0xe0] sm:$0xff]  ;;  %v2011_v16 = vld [vmem:[#allocation2 + $0xf0] sm:$0xff] }
  0x45   :  { %393 = vst.msk [vmem:[#allocation3 + $0x1f0] sm:$0xff] %vm43_vm0, %v1948_v50  ;;  %519 = vst.msk [vmem:[#allocation3 + $0x180] sm:$0xff] %vm43_vm0, %v1960_v53  ;;  %v2003_v11 = vld [vmem:[#allocation2 + $0xe2] sm:$0xff]  ;;  %v777_v18 = vld [vmem:[#allocation7 + $0x158] sm:$0xff] }
  0x46   :  { %265 = vst.msk [vmem:[#allocation3 + $0x1e8] sm:$0xff] %vm43_vm0, %v1958_v52  ;;  %390 = vst.msk [vmem:[#allocation3 + $0x178] sm:$0xff] %vm43_vm0, %v1970_v54  ;;  %v792_v20 = vld [vmem:[#allocation7 + $0x1d0] sm:$0xff]  ;;  %v109_v21 = vld [vmem:[#allocation2 + $0x8] sm:$0xff]  ;;  %1500 = vmatpush3.msra.mxu1 %v777_v18 }
  0x47   :  { %520 = vst.msk [vmem:[#allocation3 + $0x1a8] sm:$0xff] %vm43_vm0, %v1974_v56  ;;  %266 = vst.msk [vmem:[#allocation3 + $0x210] sm:$0xff] %vm43_vm0, %v1972_v55  ;;  %307 = vrot.lane.b32.xlu0 %v1858_v31, %s1761_s0  ;;  %v108_v22 = vld [vmem:[#allocation2] sm:$0xff]  ;;  %v776_v26 = vld [vmem:[#allocation7 + $0x150] sm:$0xff]  ;;  %1501 = vmatprep.subr.mxu1 %v792_v20 }
  0x48   :  { %267 = vst.msk [vmem:[#allocation3 + $0x238] sm:$0xff] %vm43_vm0, %v1990_v60  ;;  %521 = vst.msk [vmem:[#allocation3 + $0x1d0] sm:$0xff] %vm43_vm0, %v1998_v5  ;;  %564 = vrot.lane.b32.xlu1 %v1860_v32, %s1761_s0  ;;  %v742_v25 = vld [vmem:[#allocation7 + $0x40] sm:$0xff]  ;;  %v757_v27 = vld [vmem:[#allocation7 + $0xb8] sm:$0xff]  ;;  %1502 = vmatpush3.msra.mxu1 %v776_v26 }
  0x49   :  { %268 = vst.msk [vmem:[#allocation3 + $0x260] sm:$0xff] %vm43_vm0, %v2003_v11  ;;  %522 = vst.msk [vmem:[#allocation3 + $0x1f8] sm:$0xff] %vm43_vm0, %v2011_v16  ;;  %v791_v29 = vld [vmem:[#allocation7 + $0x1c8] sm:$0xff]  ;;  %v741_v30 = vld [vmem:[#allocation7 + $0x38] sm:$0xff]  ;;  %1426 = vmatpush3.msra.mxu0 %v742_v25 }
  0x4a   :  { %125 = vst.msk [vmem:[#allocation3 + $0x28] sm:$0xff] %vm43_vm0, %v109_v21  ;;  %124 = vst.msk [vmem:[#allocation3] sm:$0xff] %vm43_vm0, %v108_v22  ;;  %v775_v31 = vld [vmem:[#allocation7 + $0x148] sm:$0xff]  ;;  %1427 = vmatprep.subr.mxu0 %v757_v27  ;;  %1503 = vmatprep.subr.mxu1 %v791_v29  ;;  %v790_v57 = vld [vmem:[#allocation7 + $0x1c0] sm:$0xff] }
  0x4b   :  { %178 = vrot.lane.b32.xlu0 %v1870_v33, %s1761_s0  ;;  %v237_v33 = vld [vmem:[#allocation2 + $0x2] sm:$0xff]  ;;  %v2026_v58 = vld [vmem:[#allocation2 + $0xf8] sm:$0xff]  ;;  %1428 = vmatpush3.msra.mxu0 %v741_v30  ;;  %v740_v59 = vld [vmem:[#allocation7 + $0x30] sm:$0xff] }
  0x4c   :  { %435 = vrot.lane.b32.xlu1 %v1872_v34, %s1761_s0  ;;  %253 = vst.msk [vmem:[#allocation3 + $0x8] sm:$0xff] %vm43_vm0, %v237_v33  ;;  %v756_v34 = vld [vmem:[#allocation7 + $0xb0] sm:$0xff]  ;;  %1504 = vmatpush3.msra.mxu1 %v775_v31  ;;  %523 = vst.msk [vmem:[#allocation3 + $0x220] sm:$0xff] %vm43_vm0, %v2026_v58  ;;  %v789_v61 = vld [vmem:[#allocation7 + $0x1b8] sm:$0xff] }
  0x4d   :  { %1429 = vmatprep.subr.mxu0 %v756_v34  ;;  %1505 = vmatprep.subr.mxu1 %v790_v57  ;;  %v2034_v62 = vld [vmem:[#allocation2 + $0xfa] sm:$0xff]  ;;  %v739_v63 = vld [vmem:[#allocation7 + $0x28] sm:$0xff]  ;;  %v772_v3 = vld [vmem:[#allocation7 + $0x130] sm:$0xff] }
  0x4e   :  { %1430 = vmatpush3.msra.mxu0 %v740_v59  ;;  %v773_v0 = vld [vmem:[#allocation7 + $0x138] sm:$0xff]  ;;  %651 = vst.msk [vmem:[#allocation3 + $0x228] sm:$0xff] %vm43_vm0, %v2034_v62  ;;  %v754_v1 = vld [vmem:[#allocation7 + $0xa0] sm:$0xff]  ;;  %v238_v2 = vld [vmem:[#allocation2 + $0xa] sm:$0xff] }
  0x4f   :  { %309 = vrot.lane.b32.xlu0 %v1874_v35, %s1761_s0  ;;  %v774_v35 = vld [vmem:[#allocation7 + $0x140] sm:$0xff]  ;;  %254 = vst.msk [vmem:[#allocation3 + $0x30] sm:$0xff] %vm43_vm0, %v238_v2  ;;  %v500_v4 = vld [vmem:[#allocation2 + $0x78] sm:$0xff]  ;;  %v787_v7 = vld [vmem:[#allocation7 + $0x1a8] sm:$0xff] }
  0x50   :  { %566 = vrot.lane.b32.xlu1 %v1888_v36, %s1761_s0  ;;  %v755_v36 = vld [vmem:[#allocation7 + $0xa8] sm:$0xff]  ;;  %1506 = vmatpush3.msra.mxu1 %v774_v35  ;;  %v753_v6 = vld [vmem:[#allocation7 + $0x98] sm:$0xff]  ;;  %516 = vst.msk [vmem:[#allocation3 + $0x108] sm:$0xff] %vm43_vm0, %v500_v4  ;;  %v501_v8 = vld [vmem:[#allocation2 + $0x80] sm:$0xff] }
  0x51   :  { %1431 = vmatprep.subr.mxu0 %v755_v36  ;;  %1507 = vmatprep.subr.mxu1 %v789_v61  ;;  %v771_v9 = vld [vmem:[#allocation7 + $0x128] sm:$0xff]  ;;  %517 = vst.msk [vmem:[#allocation3 + $0x130] sm:$0xff] %vm43_vm0, %v501_v8  ;;  %v786_v10 = vld [vmem:[#allocation7 + $0x1a0] sm:$0xff]  ;;  %v736_v13 = vld [vmem:[#allocation7 + $0x10] sm:$0xff] }
  0x52   :  { %1432 = vmatpush3.msra.mxu0 %v739_v63  ;;  %1508 = vmatpush3.msra.mxu1 %v773_v0  ;;  %v532_v12 = vld [vmem:[#allocation2 + $0x79] sm:$0xff]  ;;  %v751_v15 = vld [vmem:[#allocation7 + $0x88] sm:$0xff]  ;;  %v784_v21 = vld [vmem:[#allocation7 + $0x190] sm:$0xff] }
  0x53   :  { %180 = vrot.lane.b32.xlu0 %v1835_v23, %s1761_s0  ;;  %v788_v23 = vld [vmem:[#allocation7 + $0x1b0] sm:$0xff]  ;;  %1433 = vmatprep.subr.mxu0 %v754_v1  ;;  %v770_v14 = vld [vmem:[#allocation7 + $0x120] sm:$0xff]  ;;  %v785_v17 = vld [vmem:[#allocation7 + $0x198] sm:$0xff] }
  0x54   :  { %437 = vrot.lane.b32.xlu1 %v1890_v37, %s1761_s0  ;;  %v738_v37 = vld [vmem:[#allocation7 + $0x20] sm:$0xff]  ;;  %1509 = vmatprep.subr.mxu1 %v788_v23  ;;  %v245_v18 = vld [vmem:[#allocation2 + $0x92] sm:$0xff]  ;;  %v767_v29 = vld [vmem:[#allocation7 + $0x108] sm:$0xff] }
  0x55   :  { %1434 = vmatpush3.msra.mxu0 %v738_v37  ;;  %1510 = vmatpush3.msra.mxu1 %v772_v3  ;;  %261 = vst.msk [vmem:[#allocation3 + $0x148] sm:$0xff] %vm43_vm0, %v245_v18  ;;  %v403_v19 = vld [vmem:[#allocation2 + $0x62] sm:$0xff]  ;;  %v768_v25 = vld [vmem:[#allocation7 + $0x110] sm:$0xff]  ;;  %v2057_v31 = vld [vmem:[#allocation7 + $0x238] sm:$0xff] }
  0x56   :  { %1435 = vmatprep.subr.mxu0 %v753_v6  ;;  %1511 = vmatprep.subr.mxu1 %v787_v7  ;;  %v750_v20 = vld [vmem:[#allocation7 + $0x80] sm:$0xff]  ;;  %v116_v26 = vld [vmem:[#allocation2 + $0x90] sm:$0xff]  ;;  %v117_v57 = vld [vmem:[#allocation2 + $0x98] sm:$0xff] }
  0x57   :  { %311 = vrot.lane.b32.xlu0 %v1892_v38, %s1761_s0  ;;  %v737_v38 = vld [vmem:[#allocation7 + $0x18] sm:$0xff]  ;;  %1512 = vmatpush3.msra.mxu1 %v771_v9  ;;  %v734_v22 = vld [vmem:[#allocation7] sm:$0xff]  ;;  %132 = vst.msk [vmem:[#allocation3 + $0x140] sm:$0xff] %vm43_vm0, %v116_v26  ;;  %v404_v34 = vld [vmem:[#allocation2 + $0x6a] sm:$0xff] }
  0x58   :  { %568 = vrot.lane.b32.xlu1 %v1902_v39, %s1761_s0  ;;  %v752_v39 = vld [vmem:[#allocation7 + $0x90] sm:$0xff]  ;;  %1436 = vmatpush3.msra.mxu0 %v737_v38  ;;  %v533_v27 = vld [vmem:[#allocation2 + $0x81] sm:$0xff]  ;;  %133 = vst.msk [vmem:[#allocation3 + $0x168] sm:$0xff] %vm43_vm0, %v117_v57  ;;  %v801_v26 = vld [vmem:[#allocation7 + $0x218] sm:$0xff] }
  0x59   :  { %1437 = vmatprep.subr.mxu0 %v752_v39  ;;  %1513 = vmatprep.subr.mxu1 %v786_v10  ;;  %v782_v30 = vld [vmem:[#allocation7 + $0x180] sm:$0xff]  ;;  %v631_v36 = vld [vmem:[#allocation2 + $0xca] sm:$0xff]  ;;  %v625_v23 = vld [vmem:[#allocation2 + $0x52] sm:$0xff] }
  0x5a   :  { %1438 = vmatpush3.msra.mxu0 %v736_v13  ;;  %1514 = vmatpush3.msra.mxu1 %v770_v14  ;;  %v246_v33 = vld [vmem:[#allocation2 + $0x9a] sm:$0xff]  ;;  %v630_v59 = vld [vmem:[#allocation2 + $0xc2] sm:$0xff]  ;;  %647 = vst.msk [vmem:[#allocation3 + $0x188] sm:$0xff] %vm43_vm0, %v631_v36  ;;  %v624_v61 = vld [vmem:[#allocation2 + $0x4a] sm:$0xff] }
  0x5b   :  { %182 = vrot.lane.b32.xlu0 %v1840_v24, %s1761_s0  ;;  %v735_v24 = vld [vmem:[#allocation7 + $0x8] sm:$0xff]  ;;  %1439 = vmatprep.subr.mxu0 %v751_v15  ;;  %262 = vst.msk [vmem:[#allocation3 + $0x170] sm:$0xff] %vm43_vm0, %v246_v33  ;;  %646 = vst.msk [vmem:[#allocation3 + $0x160] sm:$0xff] %vm43_vm0, %v630_v59  ;;  %v623_v35 = vld [vmem:[#allocation2 + $0x3a] sm:$0xff] }
  0x5c   :  { %439 = vrot.lane.b32.xlu1 %v1904_v40, %s1761_s0  ;;  %v769_v40 = vld [vmem:[#allocation7 + $0x118] sm:$0xff]  ;;  %1515 = vmatprep.subr.mxu1 %v785_v17  ;;  %639 = vst.msk [vmem:[#allocation3 + $0x48] sm:$0xff] %vm43_vm0, %v623_v35  ;;  %640 = vst.msk [vmem:[#allocation3 + $0x70] sm:$0xff] %vm43_vm0, %v624_v61  ;;  %v633_v2 = vld [vmem:[#allocation2 + $0xe2] sm:$0xff] }
  0x5d   :  { %1440 = vmatpush3.msra.mxu0 %v735_v24  ;;  %1516 = vmatpush3.msra.mxu1 %v769_v40  ;;  %v632_v63 = vld [vmem:[#allocation2 + $0xda] sm:$0xff]  ;;  %641 = vst.msk [vmem:[#allocation3 + $0x98] sm:$0xff] %vm43_vm0, %v625_v23  ;;  %649 = vst.msk [vmem:[#allocation3 + $0x1d8] sm:$0xff] %vm43_vm0, %v633_v2  ;;  %v634_v4 = vld [vmem:[#allocation2 + $0xf2] sm:$0xff] }
  0x5e   :  { %1441 = vmatprep.subr.mxu0 %v750_v20  ;;  %1517 = vmatprep.subr.mxu1 %v784_v21  ;;  %648 = vst.msk [vmem:[#allocation3 + $0x1b0] sm:$0xff] %vm43_vm0, %v632_v63  ;;  %650 = vst.msk [vmem:[#allocation3 + $0x200] sm:$0xff] %vm43_vm0, %v634_v4  ;;  %v627_v6 = vld [vmem:[#allocation2 + $0x6a] sm:$0xff] }
  0x5f   :  { %313 = vrot.lane.b32.xlu0 %v1906_v41, %s1761_s0  ;;  %v783_v41 = vld [vmem:[#allocation7 + $0x188] sm:$0xff]  ;;  %1442 = vmatpush3.msra.mxu0 %v734_v22  ;;  %643 = vst.msk [vmem:[#allocation3 + $0xe8] sm:$0xff] %vm43_vm0, %v627_v6  ;;  %v804_v9 = vld [vmem:[#allocation7 + $0x230] sm:$0xff]  ;;  %v802_v22 = vld [vmem:[#allocation7 + $0x220] sm:$0xff] }
  0x60   :  { %570 = vrot.lane.b32.xlu1 %v532_v12, %s1761_s0  ;;  %1518 = vmatpush3.msra.mxu1 %v768_v25  ;;  %v636_v10 = vld [vmem:[#allocation2 + $0x10a] sm:$0xff]  ;;  %v629_v12 = vld [vmem:[#allocation2 + $0x82] sm:$0xff] }
  0x61   :  { %1519 = vmatprep.subr.mxu1 %v783_v41  ;;  %1595 = vmatprep.subr.mxu0 %v2057_v31  ;;  %652 = vst.msk [vmem:[#allocation3 + $0x250] sm:$0xff] %vm43_vm0, %v636_v10  ;;  %645 = vst.msk [vmem:[#allocation3 + $0x138] sm:$0xff] %vm43_vm0, %v629_v12  ;;  %v803_v13 = vld [vmem:[#allocation7 + $0x228] sm:$0xff] }
  0x62   :  { %1520 = vmatpush3.msra.mxu1 %v767_v29 }
  0x63   :  { %184 = vrot.lane.b32.xlu0 %v1848_v28, %s1761_s0  ;;  %v766_v28 = vld [vmem:[#allocation7 + $0x100] sm:$0xff]  ;;  %1521 = vmatprep.subr.mxu1 %v782_v30 }
  0x64   :  { %441 = vrot.lane.b32.xlu1 %v403_v19, %s1761_s0  ;;  %1522 = vmatpush3.msra.mxu1 %v766_v28 }
  0x65   :  { %1635 = vmatprep.subr.mxu1 %v2057_v31 }
  0x67   :  { %315 = vrot.lane.b32.xlu0 %v1916_v42, %s1761_s0  ;;  %v148_v42 = vld [vmem:[#allocation2 + $0x91] sm:$0xff] }
  0x68   :  { %572 = vrot.lane.b32.xlu1 %v533_v27, %s1761_s0 }
  0x6b   :  { %186 = vrot.lane.b32.xlu0 %v1860_v32, %s1761_s0  ;;  %v149_v32 = vld [vmem:[#allocation2 + $0x99] sm:$0xff] }
  0x6c   :  { %443 = vrot.lane.b32.xlu1 %v404_v34, %s1761_s0 }
  0x6f   :  { %317 = vrot.lane.b32.xlu0 %v1924_v43, %s1761_s0  ;;  %v2091_v43 = vld [vmem:[#allocation2 + $0xe1] sm:$0xff] }
  0x70   :  { %574 = vrot.lane.b32.xlu1 %v1926_v44, %s1761_s0 }
  0x73   :  { %188 = vrot.lane.b32.xlu0 %v148_v42, %s1761_s0  ;;  %v799_v42 = vld [vmem:[#allocation7 + $0x208] sm:$0xff] }
  0x74   :  { %445 = vrot.lane.b32.xlu1 %v1928_v45, %s1761_s0  ;;  %v121_v45 = vld [vmem:[#allocation2 + $0xc8] sm:$0xff] }
  0x75   :  { %137 = vst.msk [vmem:[#allocation3 + $0x208] sm:$0xff] %vm43_vm0, %v121_v45 }
  0x77   :  { %319 = vrot.lane.b32.xlu0 %v1934_v46, %s1761_s0  ;;  %v538_v46 = vld [vmem:[#allocation2 + $0xf1] sm:$0xff] }
  0x78   :  { %576 = vrot.lane.b32.xlu1 %v1936_v47, %s1761_s0 }
  0x7b   :  { %190 = vrot.lane.b32.xlu0 %v149_v32, %s1761_s0  ;;  %v798_v32 = vld [vmem:[#allocation7 + $0x200] sm:$0xff] }
  0x7c   :  { %447 = vrot.lane.b32.xlu1 %v1938_v48, %s1761_s0  ;;  %v378_v48 = vld [vmem:[#allocation2 + $0xe1] sm:$0xff] }
  0x7d   :  { %394 = vst.msk [vmem:[#allocation3 + $0x218] sm:$0xff] %vm43_vm0, %v378_v48 }
  0x7f   :  { %321 = vrot.lane.b32.xlu0 %v1946_v49, %s1761_s0  ;;  %v508_v49 = vld [vmem:[#allocation2 + $0x108] sm:$0xff] }
  0x80   :  { %578 = vrot.lane.b32.xlu1 %v1948_v50, %s1761_s0  ;;  %524 = vst.msk [vmem:[#allocation3 + $0x248] sm:$0xff] %vm43_vm0, %v508_v49 }
  0x83   :  { %192 = vrot.lane.b32.xlu0 %v1950_v51, %s1761_s0  ;;  %v122_v51 = vld [vmem:[#allocation2 + $0xd8] sm:$0xff] }
  0x84   :  { %449 = vrot.lane.b32.xlu1 %v1958_v52, %s1761_s0  ;;  %138 = vst.msk [vmem:[#allocation3 + $0x230] sm:$0xff] %vm43_vm0, %v122_v51  ;;  %v539_v52 = vld [vmem:[#allocation2 + $0xf9] sm:$0xff] }
  0x87   :  { %323 = vrot.lane.b32.xlu0 %v1960_v53, %s1761_s0  ;;  %v379_v53 = vld [vmem:[#allocation2 + $0xf1] sm:$0xff] }
  0x88   :  { %580 = vrot.lane.b32.xlu1 %v2091_v43, %s1761_s0  ;;  %395 = vst.msk [vmem:[#allocation3 + $0x240] sm:$0xff] %vm43_vm0, %v379_v53 }
  0x8b   :  { %194 = vrot.lane.b32.xlu0 %v1970_v54, %s1761_s0  ;;  %v509_v54 = vld [vmem:[#allocation2 + $0x110] sm:$0xff] }
  0x8c   :  { %451 = vrot.lane.b32.xlu1 %v1972_v55, %s1761_s0  ;;  %525 = vst.msk [vmem:[#allocation3 + $0x270] sm:$0xff] %vm43_vm0, %v509_v54  ;;  %v123_v55 = vld [vmem:[#allocation2 + $0xe0] sm:$0xff] }
  0x8d   :  { %139 = vst.msk [vmem:[#allocation3 + $0x258] sm:$0xff] %vm43_vm0, %v123_v55 }
  0x8f   :  { %325 = vrot.lane.b32.xlu0 %v1974_v56, %s1761_s0  ;;  %v380_v56 = vld [vmem:[#allocation2 + $0xf9] sm:$0xff] }
  0x90   :  { %582 = vrot.lane.b32.xlu1 %v538_v46, %s1761_s0  ;;  %396 = vst.msk [vmem:[#allocation3 + $0x268] sm:$0xff] %vm43_vm0, %v380_v56 }
  0x93   :  { %196 = vrot.lane.b32.xlu0 %v1926_v44, %s1761_s0  ;;  %v540_v44 = vld [vmem:[#allocation2 + $0x109] sm:$0xff] }
  0x94   :  { %453 = vrot.lane.b32.xlu1 %v1990_v60, %s1761_s0 }
  0x97   :  { %327 = vrot.lane.b32.xlu0 %v1998_v5, %s1761_s0  ;;  %v173_v5 = vpop.permute.xlu1 %172 }
  0x98   :  { %584 = vrot.lane.b32.xlu1 %v539_v52, %s1761_s0  ;;  %v175_v60 = vpop.permute.xlu0 %174  ;;  %221 = vst.msk [vmem:[#allocation3] sm:$0xff] %vm220_vm3, %v173_v5 }
  0x99   :  { %222 = vst.msk [vmem:[#allocation3 + $0x28] sm:$0xff] %vm220_vm3, %v175_v60 }
  0x9b   :  { %198 = vrot.lane.b32.xlu0 %v1936_v47, %s1761_s0  ;;  %v411_v47 = vld [vmem:[#allocation2 + $0xf2] sm:$0xff] }
  0x9c   :  { %455 = vrot.lane.b32.xlu1 %v2003_v11, %s1761_s0  ;;  %v622_v11 = vld [vmem:[#allocation2 + $0x32] sm:$0xff] }
  0x9d   :  { %638 = vst.msk [vmem:[#allocation3 + $0x20] sm:$0xff] %vm43_vm0, %v622_v11 }
  0x9f   :  { %329 = vrot.lane.b32.xlu0 %v2011_v16, %s1761_s0  ;;  %v541_v16 = vld [vmem:[#allocation2 + $0x111] sm:$0xff]  ;;  %v654_v39 = vld [vmem:[#allocation3] sm:$0xff] }
  0xa0   :  { %586 = vrot.lane.b32.xlu1 %v540_v44, %s1761_s0  ;;  %v659_v25 = vld [vmem:[#allocation3 + $0x28] sm:$0xff] }
  0xa3   :  { %200 = vrot.lane.b32.xlu0 %v1948_v50, %s1761_s0  ;;  %v626_v50 = vld [vmem:[#allocation2 + $0x62] sm:$0xff] }
  0xa4   :  { %457 = vrot.lane.b32.xlu1 %v411_v47, %s1761_s0  ;;  %642 = vst.msk [vmem:[#allocation3 + $0xc0] sm:$0xff] %vm43_vm0, %v626_v50 }
  0xa5   :  { %v302_v0 = vpop.permute.xlu0 %301 }
  0xa6   :  { %v430_v1 = vpop.permute.xlu1 %429  ;;  %349 = vst.msk [vmem:[#allocation3 + $0x8] sm:$0xff] %vm220_vm3, %v302_v0 }
  0xa7   :  { %477 = vst.msk [vmem:[#allocation3 + $0x10] sm:$0xff] %vm220_vm3, %v430_v1  ;;  %331 = vrot.lane.b32.xlu0 %v2026_v58, %s1761_s0  ;;  %v628_v58 = vld [vmem:[#allocation2 + $0x7a] sm:$0xff] }
  0xa8   :  { %588 = vrot.lane.b32.xlu1 %v541_v16, %s1761_s0  ;;  %644 = vst.msk [vmem:[#allocation3 + $0x110] sm:$0xff] %vm43_vm0, %v628_v58 }
  0xa9   :  { %v559_v37 = vpop.permute.xlu0 %558 }
  0xaa   :  { %v561_v3 = vpop.permute.xlu1 %560  ;;  %606 = vst.msk [vmem:[#allocation3 + $0x18] sm:$0xff] %vm220_vm3, %v559_v37 }
  0xab   :  { %607 = vst.msk [vmem:[#allocation3 + $0x40] sm:$0xff] %vm220_vm3, %v561_v3  ;;  %202 = vrot.lane.b32.xlu0 %v2091_v43, %s1761_s0 }
  0xac   :  { %459 = vrot.lane.b32.xlu1 %v2034_v62, %s1761_s0  ;;  %v637_v62 = vld [vmem:[#allocation2 + $0x112] sm:$0xff] }
  0xad   :  { %v304_v7 = vpop.permute.xlu0 %303  ;;  %v655_v38 = vld [vmem:[#allocation3 + $0x8] sm:$0xff]  ;;  %653 = vst.msk [vmem:[#allocation3 + $0x278] sm:$0xff] %vm43_vm0, %v637_v62 }
  0xae   :  { %v432_v8 = vpop.permute.xlu1 %431  ;;  %350 = vst.msk [vmem:[#allocation3 + $0x30] sm:$0xff] %vm220_vm3, %v304_v7  ;;  %925 = vmatprep.mubr.f32.mxu0 %v655_v38  ;;  %v656_v18 = vld [vmem:[#allocation3 + $0x10] sm:$0xff] }
  0xaf   :  { %478 = vst.msk [vmem:[#allocation3 + $0x38] sm:$0xff] %vm220_vm3, %v432_v8  ;;  %926 = vmatmul.mubr.f32.vlgmr.msra.gmra.mxu0 %v654_v39 }
  0xb0   :  { %1596 = vmatpush3.msra.mxu0 %v2057_v31 }
  0xb1   :  { %v306_v14 = vpop.permute.xlu0 %305  ;;  %v657_v17 = vld [vmem:[#allocation3 + $0x18] sm:$0xff]  ;;  %1597 = vmatprep.subr.mxu0 %v804_v9 }
  0xb2   :  { %v563_v15 = vpop.permute.xlu1 %562  ;;  %351 = vst.msk [vmem:[#allocation3 + $0x58] sm:$0xff] %vm220_vm3, %v306_v14  ;;  %1070 = vmatprep.mubr.f32.mxu1 %v657_v17  ;;  %1598 = vmatpush3.msra.mxu0 %v804_v9  ;;  %v662_v24 = vld [vmem:[#allocation3 + $0x40] sm:$0xff] }
  0xb3   :  { %608 = vst.msk [vmem:[#allocation3 + $0x68] sm:$0xff] %vm220_vm3, %v563_v15  ;;  %1071 = vmatmul.mubr.f32.vlgmr.msra.gmra.mxu1 %v656_v18  ;;  %1599 = vmatprep.subr.mxu0 %v803_v13 }
  0xb4   :  { %1075 = vmatprep.mubr.f32.mxu1 %v662_v24  ;;  %1643 = vmatpush3.msra.mxu1 %v2057_v31  ;;  %v800_v31 = vld [vmem:[#allocation7 + $0x210] sm:$0xff] }
  0xb5   :  { %v177_v40 = vpop.permute.xlu0 %176  ;;  %v660_v20 = vld [vmem:[#allocation3 + $0x30] sm:$0xff]  ;;  %1636 = vmatprep.subr.mxu1 %v804_v9  ;;  %1600 = vmatpush3.msra.mxu0 %v803_v13 }
  0xb6   :  { %v434_v19 = vpop.permute.xlu1 %433  ;;  %v661_v21 = vld [vmem:[#allocation3 + $0x38] sm:$0xff]  ;;  %223 = vst.msk [vmem:[#allocation3 + $0x50] sm:$0xff] %vm220_vm3, %v177_v40  ;;  %930 = vmatprep.mubr.f32.mxu0 %v660_v20  ;;  %1644 = vmatpush3.msra.mxu1 %v804_v9 }
  0xb7   :  { %479 = vst.msk [vmem:[#allocation3 + $0x60] sm:$0xff] %vm220_vm3, %v434_v19  ;;  %931 = vmatmul.mubr.f32.gmra.mxu0 %v659_v25  ;;  %1076 = vmatmul.mubr.f32.gmra.mxu1 %v661_v21 }
  0xb8   :  { %1637 = vmatprep.subr.mxu1 %v803_v13  ;;  %1601 = vmatprep.subr.mxu0 %v802_v22 }
  0xb9   :  { %v308_v41 = vpop.permute.xlu0 %307  ;;  %v665_v29 = vld [vmem:[#allocation3 + $0x58] sm:$0xff]  ;;  %1645 = vmatpush3.msra.mxu1 %v803_v13  ;;  %1602 = vmatpush3.msra.mxu0 %v802_v22 }
  0xba   :  { %v565_v27 = vpop.permute.xlu1 %564  ;;  %v667_v30 = vld [vmem:[#allocation3 + $0x68] sm:$0xff]  ;;  %352 = vst.msk [vmem:[#allocation3 + $0x80] sm:$0xff] %vm220_vm3, %v308_v41  ;;  %935 = vmatprep.mubr.f32.mxu0 %v665_v29  ;;  %1638 = vmatprep.subr.mxu1 %v802_v22 }
  0xbb   :  { %609 = vst.msk [vmem:[#allocation3 + $0x90] sm:$0xff] %vm220_vm3, %v565_v27  ;;  %1080 = vmatprep.mubr.f32.mxu1 %v667_v30  ;;  %1603 = vmatprep.subr.mxu0 %v801_v26 }
  0xbc   :  { %1646 = vmatpush3.msra.mxu1 %v802_v22  ;;  %1604 = vmatpush3.msra.mxu0 %v801_v26 }
  0xbd   :  { %v179_v33 = vpop.permute.xlu0 %178  ;;  %v664_v34 = vld [vmem:[#allocation3 + $0x50] sm:$0xff]  ;;  %1639 = vmatprep.subr.mxu1 %v801_v26  ;;  %1605 = vmatprep.subr.mxu0 %v800_v31 }
  0xbe   :  { %v436_v28 = vpop.permute.xlu1 %435  ;;  %v666_v57 = vld [vmem:[#allocation3 + $0x60] sm:$0xff]  ;;  %224 = vst.msk [vmem:[#allocation3 + $0x78] sm:$0xff] %vm220_vm3, %v179_v33  ;;  %936 = vmatmul.mubr.f32.gmra.mxu0 %v664_v34  ;;  %1647 = vmatpush3.msra.mxu1 %v801_v26 }
  0xbf   :  { %480 = vst.msk [vmem:[#allocation3 + $0x88] sm:$0xff] %vm220_vm3, %v436_v28  ;;  %1081 = vmatmul.mubr.f32.gmra.mxu1 %v666_v57  ;;  %1606 = vmatpush3.msra.mxu0 %v800_v31 }
  0xc0   :  { %1640 = vmatprep.subr.mxu1 %v800_v31  ;;  %1607 = vmatprep.subr.mxu0 %v799_v42 }
  0xc1   :  { %v310_v43 = vpop.permute.xlu0 %309  ;;  %v670_v46 = vld [vmem:[#allocation3 + $0x80] sm:$0xff]  ;;  %1648 = vmatpush3.msra.mxu1 %v800_v31  ;;  %1608 = vmatpush3.msra.mxu0 %v799_v42 }
  0xc2   :  { %v567_v45 = vpop.permute.xlu1 %566  ;;  %v672_v48 = vld [vmem:[#allocation3 + $0x90] sm:$0xff]  ;;  %353 = vst.msk [vmem:[#allocation3 + $0xa8] sm:$0xff] %vm220_vm3, %v310_v43  ;;  %940 = vmatprep.mubr.f32.mxu0 %v670_v46  ;;  %1641 = vmatprep.subr.mxu1 %v799_v42 }
  0xc3   :  { %610 = vst.msk [vmem:[#allocation3 + $0xb8] sm:$0xff] %vm220_vm3, %v567_v45  ;;  %1085 = vmatprep.mubr.f32.mxu1 %v672_v48  ;;  %1609 = vmatprep.subr.mxu0 %v798_v32 }
  0xc4   :  { %1649 = vmatpush3.msra.mxu1 %v799_v42  ;;  %1610 = vmatpush3.msra.mxu0 %v798_v32 }
  0xc5   :  { %v181_v49 = vpop.permute.xlu0 %180  ;;  %v669_v52 = vld [vmem:[#allocation3 + $0x78] sm:$0xff]  ;;  %1642 = vmatprep.subr.mxu1 %v798_v32 }
  0xc6   :  { %v438_v51 = vpop.permute.xlu1 %437  ;;  %v671_v53 = vld [vmem:[#allocation3 + $0x88] sm:$0xff]  ;;  %225 = vst.msk [vmem:[#allocation3 + $0xa0] sm:$0xff] %vm220_vm3, %v181_v49  ;;  %941 = vmatmul.mubr.f32.gmra.mxu0 %v669_v52  ;;  %1650 = vmatpush3.msra.mxu1 %v798_v32 }
  0xc7   :  { %481 = vst.msk [vmem:[#allocation3 + $0xb0] sm:$0xff] %vm220_vm3, %v438_v51  ;;  %1086 = vmatmul.mubr.f32.gmra.mxu1 %v671_v53 }
  0xc9   :  { %v312_v54 = vpop.permute.xlu0 %311  ;;  %v675_v44 = vld [vmem:[#allocation3 + $0xa8] sm:$0xff] }
  0xca   :  { %v569_v55 = vpop.permute.xlu1 %568  ;;  %v677_v56 = vld [vmem:[#allocation3 + $0xb8] sm:$0xff]  ;;  %354 = vst.msk [vmem:[#allocation3 + $0xd0] sm:$0xff] %vm220_vm3, %v312_v54  ;;  %945 = vmatprep.mubr.f32.mxu0 %v675_v44 }
  0xcb   :  { %611 = vst.msk [vmem:[#allocation3 + $0xe0] sm:$0xff] %vm220_vm3, %v569_v55  ;;  %1090 = vmatprep.mubr.f32.mxu1 %v677_v56 }
  0xcd   :  { %v183_v60 = vpop.permute.xlu0 %182  ;;  %v674_v47 = vld [vmem:[#allocation3 + $0xa0] sm:$0xff] }
  0xce   :  { %v440_v5 = vpop.permute.xlu1 %439  ;;  %v676_v11 = vld [vmem:[#allocation3 + $0xb0] sm:$0xff]  ;;  %226 = vst.msk [vmem:[#allocation3 + $0xc8] sm:$0xff] %vm220_vm3, %v183_v60  ;;  %946 = vmatmul.mubr.f32.gmra.mxu0 %v674_v47 }
  0xcf   :  { %482 = vst.msk [vmem:[#allocation3 + $0xd8] sm:$0xff] %vm220_vm3, %v440_v5  ;;  %1091 = vmatmul.mubr.f32.gmra.mxu1 %v676_v11 }
  0xd1   :  { %v314_v59 = vpop.permute.xlu0 %313  ;;  %v680_v36 = vld [vmem:[#allocation3 + $0xd0] sm:$0xff] }
  0xd2   :  { %v571_v35 = vpop.permute.xlu1 %570  ;;  %v682_v16 = vld [vmem:[#allocation3 + $0xe0] sm:$0xff]  ;;  %355 = vst.msk [vmem:[#allocation3 + $0xf8] sm:$0xff] %vm220_vm3, %v314_v59  ;;  %950 = vmatprep.mubr.f32.mxu0 %v680_v36 }
  0xd3   :  { %612 = vst.msk [vmem:[#allocation3 + $0x108] sm:$0xff] %vm220_vm3, %v571_v35  ;;  %1095 = vmatprep.mubr.f32.mxu1 %v682_v16 }
  0xd5   :  { %v185_v61 = vpop.permute.xlu0 %184  ;;  %v679_v0 = vld [vmem:[#allocation3 + $0xc8] sm:$0xff] }
  0xd6   :  { %v442_v63 = vpop.permute.xlu1 %441  ;;  %v681_v1 = vld [vmem:[#allocation3 + $0xd8] sm:$0xff]  ;;  %227 = vst.msk [vmem:[#allocation3 + $0xf0] sm:$0xff] %vm220_vm3, %v185_v61  ;;  %951 = vmatmul.mubr.f32.gmra.mxu0 %v679_v0 }
  0xd7   :  { %483 = vst.msk [vmem:[#allocation3 + $0x100] sm:$0xff] %vm220_vm3, %v442_v63  ;;  %1096 = vmatmul.mubr.f32.gmra.mxu1 %v681_v1 }
  0xd9   :  { %v316_v23 = vpop.permute.xlu0 %315  ;;  %v685_v50 = vld [vmem:[#allocation3 + $0xf8] sm:$0xff] }
  0xda   :  { %v573_v2 = vpop.permute.xlu1 %572  ;;  %v687_v37 = vld [vmem:[#allocation3 + $0x108] sm:$0xff]  ;;  %356 = vst.msk [vmem:[#allocation3 + $0x120] sm:$0xff] %vm220_vm3, %v316_v23  ;;  %955 = vmatprep.mubr.f32.mxu0 %v685_v50 }
  0xdb   :  { %613 = vst.msk [vmem:[#allocation3 + $0x130] sm:$0xff] %vm220_vm3, %v573_v2  ;;  %1100 = vmatprep.mubr.f32.mxu1 %v687_v37 }
  0xdd   :  { %v187_v3 = vpop.permute.xlu0 %186  ;;  %v684_v6 = vld [vmem:[#allocation3 + $0xf0] sm:$0xff] }
  0xde   :  { %v444_v4 = vpop.permute.xlu1 %443  ;;  %v686_v58 = vld [vmem:[#allocation3 + $0x100] sm:$0xff]  ;;  %228 = vst.msk [vmem:[#allocation3 + $0x118] sm:$0xff] %vm220_vm3, %v187_v3  ;;  %956 = vmatmul.mubr.f32.gmra.mxu0 %v684_v6 }
  0xdf   :  { %484 = vst.msk [vmem:[#allocation3 + $0x128] sm:$0xff] %vm220_vm3, %v444_v4  ;;  %1101 = vmatmul.mubr.f32.gmra.mxu1 %v686_v58 }
  0xe1   :  { %v318_v7 = vpop.permute.xlu0 %317  ;;  %v690_v38 = vld [vmem:[#allocation3 + $0x120] sm:$0xff] }
  0xe2   :  { %v575_v8 = vpop.permute.xlu1 %574  ;;  %v692_v9 = vld [vmem:[#allocation3 + $0x130] sm:$0xff]  ;;  %357 = vst.msk [vmem:[#allocation3 + $0x148] sm:$0xff] %vm220_vm3, %v318_v7  ;;  %960 = vmatprep.mubr.f32.mxu0 %v690_v38  ;;  %v658_v38 = vld [vmem:[#allocation3 + $0x20] sm:$0xff] }
  0xe3   :  { %614 = vst.msk [vmem:[#allocation3 + $0x158] sm:$0xff] %vm220_vm3, %v575_v8  ;;  %1105 = vmatprep.mubr.f32.mxu1 %v692_v9  ;;  %v698_v9 = vld [vmem:[#allocation3 + $0x160] sm:$0xff] }
  0xe5   :  { %v189_v39 = vpop.permute.xlu0 %188  ;;  %v689_v12 = vld [vmem:[#allocation3 + $0x118] sm:$0xff] }
  0xe6   :  { %v446_v10 = vpop.permute.xlu1 %445  ;;  %v691_v62 = vld [vmem:[#allocation3 + $0x128] sm:$0xff]  ;;  %229 = vst.msk [vmem:[#allocation3 + $0x140] sm:$0xff] %vm220_vm3, %v189_v39  ;;  %961 = vmatmul.mubr.f32.gmra.mxu0 %v689_v12 }
  0xe7   :  { %485 = vst.msk [vmem:[#allocation3 + $0x150] sm:$0xff] %vm220_vm3, %v446_v10  ;;  %1106 = vmatmul.mubr.f32.gmra.mxu1 %v691_v62  ;;  %v663_v12 = vld [vmem:[#allocation3 + $0x48] sm:$0xff] }
  0xe8   :  { %v703_v62 = vld [vmem:[#allocation3 + $0x188] sm:$0xff] }
  0xe9   :  { %v320_v13 = vpop.permute.xlu0 %319  ;;  %v695_v15 = vld [vmem:[#allocation3 + $0x148] sm:$0xff] }
  0xea   :  { %v577_v14 = vpop.permute.xlu1 %576  ;;  %v697_v17 = vld [vmem:[#allocation3 + $0x158] sm:$0xff]  ;;  %358 = vst.msk [vmem:[#allocation3 + $0x170] sm:$0xff] %vm220_vm3, %v320_v13  ;;  %965 = vmatprep.mubr.f32.mxu0 %v695_v15  ;;  %v668_v13 = vld [vmem:[#allocation3 + $0x70] sm:$0xff] }
  0xeb   :  { %615 = vst.msk [vmem:[#allocation3 + $0x180] sm:$0xff] %vm220_vm3, %v577_v14  ;;  %1110 = vmatprep.mubr.f32.mxu1 %v697_v17  ;;  %v708_v14 = vld [vmem:[#allocation3 + $0x1b0] sm:$0xff]  ;;  %v673_v15 = vld [vmem:[#allocation3 + $0x98] sm:$0xff] }
  0xec   :  { %v713_v17 = vld [vmem:[#allocation3 + $0x1d8] sm:$0xff] }
  0xed   :  { %v191_v18 = vpop.permute.xlu0 %190  ;;  %v694_v40 = vld [vmem:[#allocation3 + $0x140] sm:$0xff] }
  0xee   :  { %v448_v24 = vpop.permute.xlu1 %447  ;;  %v696_v19 = vld [vmem:[#allocation3 + $0x150] sm:$0xff]  ;;  %230 = vst.msk [vmem:[#allocation3 + $0x168] sm:$0xff] %vm220_vm3, %v191_v18  ;;  %966 = vmatmul.mubr.f32.gmra.mxu0 %v694_v40  ;;  %v678_v18 = vld [vmem:[#allocation3 + $0xc0] sm:$0xff]  ;;  %v683_v40 = vld [vmem:[#allocation3 + $0xe8] sm:$0xff] }
  0xef   :  { %486 = vst.msk [vmem:[#allocation3 + $0x178] sm:$0xff] %vm220_vm3, %v448_v24  ;;  %1111 = vmatmul.mubr.f32.gmra.mxu1 %v696_v19  ;;  %v718_v24 = vld [vmem:[#allocation3 + $0x200] sm:$0xff]  ;;  %v723_v19 = vld [vmem:[#allocation3 + $0x228] sm:$0xff] }
  0xf1   :  { %v322_v20 = vpop.permute.xlu0 %321  ;;  %v700_v22 = vld [vmem:[#allocation3 + $0x170] sm:$0xff] }
  0xf2   :  { %v579_v21 = vpop.permute.xlu1 %578  ;;  %v702_v25 = vld [vmem:[#allocation3 + $0x180] sm:$0xff]  ;;  %359 = vst.msk [vmem:[#allocation3 + $0x198] sm:$0xff] %vm220_vm3, %v322_v20  ;;  %970 = vmatprep.mubr.f32.mxu0 %v700_v22  ;;  %v688_v20 = vld [vmem:[#allocation3 + $0x110] sm:$0xff]  ;;  %v693_v22 = vld [vmem:[#allocation3 + $0x138] sm:$0xff] }
  0xf3   :  { %616 = vst.msk [vmem:[#allocation3 + $0x1a8] sm:$0xff] %vm220_vm3, %v579_v21  ;;  %1115 = vmatprep.mubr.f32.mxu1 %v702_v25  ;;  %v728_v21 = vld [vmem:[#allocation3 + $0x250] sm:$0xff]  ;;  %v733_v25 = vld [vmem:[#allocation3 + $0x278] sm:$0xff] }
  0xf5   :  { %v193_v26 = vpop.permute.xlu0 %192  ;;  %v699_v27 = vld [vmem:[#allocation3 + $0x168] sm:$0xff] }
  0xf6   :  { %v450_v41 = vpop.permute.xlu1 %449  ;;  %v701_v29 = vld [vmem:[#allocation3 + $0x178] sm:$0xff]  ;;  %231 = vst.msk [vmem:[#allocation3 + $0x190] sm:$0xff] %vm220_vm3, %v193_v26  ;;  %971 = vmatmul.mubr.f32.gmra.mxu0 %v699_v27 }
  0xf7   :  { %487 = vst.msk [vmem:[#allocation3 + $0x1a0] sm:$0xff] %vm220_vm3, %v450_v41  ;;  %1116 = vmatmul.mubr.f32.gmra.mxu1 %v701_v29 }
  0xf9   :  { %v324_v30 = vpop.permute.xlu0 %323  ;;  %v705_v33 = vld [vmem:[#allocation3 + $0x198] sm:$0xff] }
  0xfa   :  { %v581_v31 = vpop.permute.xlu1 %580  ;;  %v707_v28 = vld [vmem:[#allocation3 + $0x1a8] sm:$0xff]  ;;  %360 = vst.msk [vmem:[#allocation3 + $0x1c0] sm:$0xff] %vm220_vm3, %v324_v30  ;;  %975 = vmatprep.mubr.f32.mxu0 %v705_v33 }
  0xfb   :  { %617 = vst.msk [vmem:[#allocation3 + $0x1d0] sm:$0xff] %vm220_vm3, %v581_v31  ;;  %1120 = vmatprep.mubr.f32.mxu1 %v707_v28 }
  0xfd   :  { %v195_v34 = vpop.permute.xlu0 %194  ;;  %v704_v42 = vld [vmem:[#allocation3 + $0x190] sm:$0xff] }
  0xfe   :  { %v452_v57 = vpop.permute.xlu1 %451  ;;  %v706_v32 = vld [vmem:[#allocation3 + $0x1a0] sm:$0xff]  ;;  %232 = vst.msk [vmem:[#allocation3 + $0x1b8] sm:$0xff] %vm220_vm3, %v195_v34  ;;  %976 = vmatmul.mubr.f32.gmra.mxu0 %v704_v42 }
  0xff   :  { %488 = vst.msk [vmem:[#allocation3 + $0x1c8] sm:$0xff] %vm220_vm3, %v452_v57  ;;  %1121 = vmatmul.mubr.f32.gmra.mxu1 %v706_v32 }
 0x101   :  { %v326_v43 = vpop.permute.xlu0 %325  ;;  %v710_v46 = vld [vmem:[#allocation3 + $0x1c0] sm:$0xff] }
 0x102   :  { %v583_v45 = vpop.permute.xlu1 %582  ;;  %v712_v48 = vld [vmem:[#allocation3 + $0x1d0] sm:$0xff]  ;;  %361 = vst.msk [vmem:[#allocation3 + $0x1e8] sm:$0xff] %vm220_vm3, %v326_v43  ;;  %980 = vmatprep.mubr.f32.mxu0 %v710_v46 }
 0x103   :  { %618 = vst.msk [vmem:[#allocation3 + $0x1f8] sm:$0xff] %vm220_vm3, %v583_v45  ;;  %1125 = vmatprep.mubr.f32.mxu1 %v712_v48 }
 0x105   :  { %v197_v49 = vpop.permute.xlu0 %196  ;;  %v709_v52 = vld [vmem:[#allocation3 + $0x1b8] sm:$0xff] }
 0x106   :  { %v454_v51 = vpop.permute.xlu1 %453  ;;  %v711_v53 = vld [vmem:[#allocation3 + $0x1c8] sm:$0xff]  ;;  %233 = vst.msk [vmem:[#allocation3 + $0x1e0] sm:$0xff] %vm220_vm3, %v197_v49  ;;  %981 = vmatmul.mubr.f32.gmra.mxu0 %v709_v52 }
 0x107   :  { %489 = vst.msk [vmem:[#allocation3 + $0x1f0] sm:$0xff] %vm220_vm3, %v454_v51  ;;  %1126 = vmatmul.mubr.f32.gmra.mxu1 %v711_v53 }
 0x109   :  { %v328_v54 = vpop.permute.xlu0 %327  ;;  %v715_v44 = vld [vmem:[#allocation3 + $0x1e8] sm:$0xff] }
 0x10a   :  { %v585_v55 = vpop.permute.xlu1 %584  ;;  %v717_v56 = vld [vmem:[#allocation3 + $0x1f8] sm:$0xff]  ;;  %362 = vst.msk [vmem:[#allocation3 + $0x210] sm:$0xff] %vm220_vm3, %v328_v54  ;;  %985 = vmatprep.mubr.f32.mxu0 %v715_v44 }
 0x10b   :  { %619 = vst.msk [vmem:[#allocation3 + $0x220] sm:$0xff] %vm220_vm3, %v585_v55  ;;  %1130 = vmatprep.mubr.f32.mxu1 %v717_v56 }
 0x10d   :  { %v199_v60 = vpop.permute.xlu0 %198  ;;  %v714_v47 = vld [vmem:[#allocation3 + $0x1e0] sm:$0xff] }
 0x10e   :  { %v456_v5 = vpop.permute.xlu1 %455  ;;  %v716_v11 = vld [vmem:[#allocation3 + $0x1f0] sm:$0xff]  ;;  %234 = vst.msk [vmem:[#allocation3 + $0x208] sm:$0xff] %vm220_vm3, %v199_v60  ;;  %986 = vmatmul.mubr.f32.gmra.mxu0 %v714_v47 }
 0x10f   :  { %490 = vst.msk [vmem:[#allocation3 + $0x218] sm:$0xff] %vm220_vm3, %v456_v5  ;;  %1131 = vmatmul.mubr.f32.gmra.mxu1 %v716_v11 }
 0x111   :  { %v330_v59 = vpop.permute.xlu0 %329  ;;  %v720_v36 = vld [vmem:[#allocation3 + $0x210] sm:$0xff] }
 0x112   :  { %v587_v35 = vpop.permute.xlu1 %586  ;;  %v722_v16 = vld [vmem:[#allocation3 + $0x220] sm:$0xff]  ;;  %363 = vst.msk [vmem:[#allocation3 + $0x238] sm:$0xff] %vm220_vm3, %v330_v59  ;;  %990 = vmatprep.mubr.f32.mxu0 %v720_v36 }
 0x113   :  { %620 = vst.msk [vmem:[#allocation3 + $0x248] sm:$0xff] %vm220_vm3, %v587_v35  ;;  %1135 = vmatprep.mubr.f32.mxu1 %v722_v16 }
 0x115   :  { %v201_v61 = vpop.permute.xlu0 %200  ;;  %v719_v0 = vld [vmem:[#allocation3 + $0x208] sm:$0xff] }
 0x116   :  { %v458_v63 = vpop.permute.xlu1 %457  ;;  %v721_v1 = vld [vmem:[#allocation3 + $0x218] sm:$0xff]  ;;  %235 = vst.msk [vmem:[#allocation3 + $0x230] sm:$0xff] %vm220_vm3, %v201_v61  ;;  %991 = vmatmul.mubr.f32.gmra.mxu0 %v719_v0 }
 0x117   :  { %491 = vst.msk [vmem:[#allocation3 + $0x240] sm:$0xff] %vm220_vm3, %v458_v63  ;;  %1136 = vmatmul.mubr.f32.gmra.mxu1 %v721_v1 }
 0x119   :  { %v332_v23 = vpop.permute.xlu0 %331  ;;  %v725_v50 = vld [vmem:[#allocation3 + $0x238] sm:$0xff] }
 0x11a   :  { %v589_v2 = vpop.permute.xlu1 %588  ;;  %v727_v37 = vld [vmem:[#allocation3 + $0x248] sm:$0xff]  ;;  %364 = vst.msk [vmem:[#allocation3 + $0x260] sm:$0xff] %vm220_vm3, %v332_v23  ;;  %995 = vmatprep.mubr.f32.mxu0 %v725_v50 }
 0x11b   :  { %621 = vst.msk [vmem:[#allocation3 + $0x270] sm:$0xff] %vm220_vm3, %v589_v2  ;;  %1140 = vmatprep.mubr.f32.mxu1 %v727_v37 }
 0x11d   :  { %v203_v3 = vpop.permute.xlu0 %202  ;;  %v724_v6 = vld [vmem:[#allocation3 + $0x230] sm:$0xff] }
 0x11e   :  { %v460_v4 = vpop.permute.xlu1 %459  ;;  %v726_v58 = vld [vmem:[#allocation3 + $0x240] sm:$0xff]  ;;  %236 = vst.msk [vmem:[#allocation3 + $0x258] sm:$0xff] %vm220_vm3, %v203_v3  ;;  %996 = vmatmul.mubr.f32.gmra.mxu0 %v724_v6 }
 0x11f   :  { %492 = vst.msk [vmem:[#allocation3 + $0x268] sm:$0xff] %vm220_vm3, %v460_v4  ;;  %1141 = vmatmul.mubr.f32.gmra.mxu1 %v726_v58 }
 0x121   :  { %v730_v7 = vld [vmem:[#allocation3 + $0x260] sm:$0xff] }
 0x122   :  { %v732_v8 = vld [vmem:[#allocation3 + $0x270] sm:$0xff]  ;;  %1000 = vmatprep.mubr.f32.mxu0 %v730_v7 }
 0x123   :  { %1145 = vmatprep.mubr.f32.mxu1 %v732_v8 }
 0x125   :  { %v729_v39 = vld [vmem:[#allocation3 + $0x258] sm:$0xff] }
 0x126   :  { %v731_v10 = vld [vmem:[#allocation3 + $0x268] sm:$0xff]  ;;  %1001 = vmatmul.mubr.f32.gmra.mxu0 %v729_v39 }
 0x127   :  { %1146 = vmatmul.mubr.f32.gmra.mxu1 %v731_v10  ;;  %1611 = vmatprep.mubr.msk.f32.mxu0 %vm43_vm0, %v658_v38 }
 0x128   :  { %1623 = vmatprep.mubr.msk.f32.mxu1 %vm43_vm0, %v698_v9 }
 0x12a   :  { %1612 = vmatmul.mubr.msk.f32.vlgmr.msra.gmra.mxu0 %vm43_vm0, %v663_v12 }
 0x12b   :  { %1624 = vmatmul.mubr.msk.f32.vlgmr.msra.gmra.mxu1 %vm43_vm0, %v703_v62  ;;  %1614 = vmatprep.mubr.msk.f32.mxu0 %vm43_vm0, %v668_v13 }
 0x12c   :  { %1626 = vmatprep.mubr.msk.f32.mxu1 %vm43_vm0, %v708_v14 }
 0x12e   :  { %1615 = vmatmul.mubr.msk.f32.gmra.mxu0 %vm43_vm0, %v673_v15 }
 0x12f   :  { %1627 = vmatmul.mubr.msk.f32.gmra.mxu1 %vm43_vm0, %v713_v17  ;;  %1617 = vmatprep.mubr.msk.f32.mxu0 %vm43_vm0, %v678_v18 }
 0x130   :  { %1629 = vmatprep.mubr.msk.f32.mxu1 %vm43_vm0, %v718_v24 }
 0x132   :  { %1618 = vmatmul.mubr.msk.f32.gmra.mxu0 %vm43_vm0, %v683_v40 }
 0x133   :  { %1630 = vmatmul.mubr.msk.f32.gmra.mxu1 %vm43_vm0, %v723_v19  ;;  %1620 = vmatprep.mubr.msk.f32.mxu0 %vm43_vm0, %v688_v20  ;;  %v2276_v20 = vld [vmem:[%s2337_s2] ss:$0 sm:$0xff]  ;;  %s1762_s2 = smov [#allocation9]  }
 0x134   :  { %1632 = vmatprep.mubr.msk.f32.mxu1 %vm43_vm0, %v728_v21  ;;  %s1381_s25 = sshll.u32 %s1762_s2, 4  ;;  %s1382_s25 = int_to_ptr.vmem [resolvable:$true] %s1381_s25 }
 0x135   :  { %s1730_s26 = scalar_lea.vmem %s1382_s25, 2048  ;;  %p1735_p11 = scmp.lt.s32.totalorder %s1382_s25, %s1382_s25 }
 0x136   :  { %1621 = vmatmul.mubr.msk.f32.gmra.mxu0 %vm43_vm0, %v693_v22  ;;  %p1731_p10 = scmp.ne.s32.totalorder %s1382_s25, %s1730_s26  ;;  %p1736_p12 = scmp.lt.s32.totalorder %s1730_s26, %s1730_s26 }
 0x137   :  { %1633 = vmatmul.mubr.msk.f32.gmra.mxu1 %vm43_vm0, %v733_v25 }
 0x138   :  { %p1737_p13 = por %p1736_p12, %p1735_p11 }
 0x13a   :  { %p1738_p0 = pnand %p1737_p13, %p1731_p10 }
 0x16f   :  { %v1443_v41 = vpop.f32.mrf.mxu0 }
 0x171   :  { %v1444_v29 = vpop.f32.mrf.mxu0 }
 0x172   :  { %v1445_v24 = vadd.f32 %v1444_v29, %v1443_v41 }
 0x173   :  { %v1523_v26 = vpop.f32.mrf.mxu1 }
 0x175   :  { %v1524_v27 = vpop.f32.mrf.mxu1 }
 0x176   :  { %v1525_v21 = vadd.f32 %v1524_v27, %v1523_v26 }
 0x177   :  { %v1446_v30 = vpop.f32.mrf.mxu0  ;;  %v2233_v31 = vpop.f32.mrf.mxu1 }
 0x179   :  { %v1447_v33 = vpop.f32.mrf.mxu0  ;;  %v2235_v28 = vpop.f32.mrf.mxu1 }
 0x17a   :  { %v1448_v15 = vadd.f32 %v1447_v33, %v1446_v30 }
 0x17c   :  { %v933_v22 = vadd.f32 %v1448_v15, %v2276_v20 }
 0x17e   :  { %v1449_v34 = vpop.f32.mrf.mxu0 }
 0x17f   :  { %v2237_v57 = vpop.f32.mrf.mxu1 }
 0x180   :  { %v1450_v42 = vpop.f32.mrf.mxu0 }
 0x181   :  { %v1530_v32 = vpop.f32.mrf.mxu1  ;;  %v1451_v17 = vadd.f32 %v1450_v42, %v1449_v34  ;;  %v928_v34 = vadd.f32 %v1445_v24, %v2276_v20  ;;  %v1528_v42 = vadd.f32 %v2235_v28, %v2233_v31 }
 0x182   :  { %v1531_v26 = vadd.f32 %v1530_v32, %v2237_v57 }
 0x183   :  { %v938_v30 = vadd.f32 %v1451_v17, %v2276_v20 }
 0x185   :  { %v1083_v31 = vadd.f32 %v1531_v26, %v938_v30 }
 0x186   :  { %v1452_v43 = vpop.f32.mrf.mxu0 }
 0x187   :  { %v1532_v45 = vpop.f32.mrf.mxu1 }
 0x188   :  { %v1453_v46 = vpop.f32.mrf.mxu0 }
 0x189   :  { %v1533_v48 = vpop.f32.mrf.mxu1  ;;  %v1454_v18 = vadd.f32 %v1453_v46, %v1452_v43 }
 0x18a   :  { %v1534_v27 = vadd.f32 %v1533_v48, %v1532_v45 }
 0x18b   :  { %v943_v33 = vadd.f32 %v1454_v18, %v2276_v20  ;;  %v1078_v18 = vadd.f32 %v1528_v42, %v933_v22 }
 0x18e   :  { %v1455_v49 = vpop.f32.mrf.mxu0 }
 0x18f   :  { %v2239_v51 = vpop.f32.mrf.mxu1 }
 0x190   :  { %v1456_v52 = vpop.f32.mrf.mxu0 }
 0x191   :  { %v2241_v53 = vpop.f32.mrf.mxu1  ;;  %v1457_v41 = vadd.f32 %v1456_v52, %v1455_v49  ;;  %v1073_v49 = vadd.f32 %v1525_v21, %v928_v34 }
 0x192   :  { %v1537_v28 = vadd.f32 %v2241_v53, %v2239_v51 }
 0x193   :  { %v948_v52 = vadd.f32 %v1457_v41, %v2276_v20 }
 0x196   :  { %v1458_v54 = vpop.f32.mrf.mxu0 }
 0x197   :  { %v2243_v55 = vpop.f32.mrf.mxu1 }
 0x198   :  { %v1459_v44 = vpop.f32.mrf.mxu0 }
 0x199   :  { %v2245_v56 = vpop.f32.mrf.mxu1  ;;  %v1460_v43 = vadd.f32 %v1459_v44, %v1458_v54 }
 0x19a   :  { %v1540_v32 = vadd.f32 %v2245_v56, %v2243_v55 }
 0x19b   :  { %v953_v57 = vadd.f32 %v1460_v43, %v2276_v20 }
 0x19e   :  { %v1461_v60 = vpop.f32.mrf.mxu0 }
 0x19f   :  { %v2247_v5 = vpop.f32.mrf.mxu1 }
 0x1a0   :  { %v1462_v47 = vpop.f32.mrf.mxu0 }
 0x1a1   :  { %v2249_v11 = vpop.f32.mrf.mxu1  ;;  %v1463_v46 = vadd.f32 %v1462_v47, %v1461_v60 }
 0x1a2   :  { %v1543_v44 = vadd.f32 %v2249_v11, %v2247_v5  ;;  %v1093_v11 = vadd.f32 %v1537_v28, %v948_v52 }
 0x1a3   :  { %v958_v45 = vadd.f32 %v1463_v46, %v2276_v20 }
 0x1a6   :  { %v1464_v59 = vpop.f32.mrf.mxu0 }
 0x1a7   :  { %v2251_v35 = vpop.f32.mrf.mxu1 }
 0x1a8   :  { %v1465_v36 = vpop.f32.mrf.mxu0 }
 0x1a9   :  { %v2253_v16 = vpop.f32.mrf.mxu1  ;;  %v1466_v15 = vadd.f32 %v1465_v36, %v1464_v59 }
 0x1ab   :  { %v963_v60 = vadd.f32 %v1466_v15, %v2276_v20 }
 0x1ae   :  { %v1467_v61 = vpop.f32.mrf.mxu0 }
 0x1af   :  { %v2255_v63 = vpop.f32.mrf.mxu1 }
 0x1b0   :  { %v1468_v0 = vpop.f32.mrf.mxu0 }
 0x1b1   :  { %v2257_v1 = vpop.f32.mrf.mxu1 }
 0x1b6   :  { %v1470_v23 = vpop.f32.mrf.mxu0 }
 0x1b7   :  { %v1550_v2 = vpop.f32.mrf.mxu1 }
 0x1b8   :  { %v1471_v50 = vpop.f32.mrf.mxu0 }
 0x1b9   :  { %v1551_v37 = vpop.f32.mrf.mxu1  ;;  %v1472_v29 = vadd.f32 %v1471_v50, %v1470_v23  ;;  %v1088_v50 = vadd.f32 %v1534_v27, %v943_v33 }
 0x1ba   :  { %v1552_v59 = vadd.f32 %v1551_v37, %v1550_v2 }
 0x1bb   :  { %v973_v23 = vadd.f32 %v1472_v29, %v2276_v20 }
 0x1bd   :  { %v1118_v5 = vadd.f32 %v1552_v59, %v973_v23 }
 0x1be   :  { %v1473_v3 = vpop.f32.mrf.mxu0 }
 0x1bf   :  { %v2259_v4 = vpop.f32.mrf.mxu1 }
 0x1c0   :  { %v1474_v6 = vpop.f32.mrf.mxu0 }
 0x1c1   :  { %v2261_v58 = vpop.f32.mrf.mxu1 }
 0x1c6   :  { %v1476_v7 = vpop.f32.mrf.mxu0 }
 0x1c7   :  { %v2263_v8 = vpop.f32.mrf.mxu1 }
 0x1c8   :  { %v1477_v38 = vpop.f32.mrf.mxu0 }
 0x1c9   :  { %v1557_v9 = vpop.f32.mrf.mxu1 }
 0x1ca   :  { %v1558_v2 = vadd.f32 %v1557_v9, %v2263_v8 }
 0x1ce   :  { %v1479_v39 = vpop.f32.mrf.mxu0 }
 0x1cf   :  { %v2265_v10 = vpop.f32.mrf.mxu1 }
 0x1d0   :  { %v1480_v12 = vpop.f32.mrf.mxu0 }
 0x1d1   :  { %v2267_v62 = vpop.f32.mrf.mxu1  ;;  %v1481_v36 = vadd.f32 %v1480_v12, %v1479_v39  ;;  %v2314_v39 = vadd.f32 %v1543_v44, %v958_v45 }
 0x1d2   :  { %2339 = vst [vmem:[#allocation13_spill] sm:$0xff] %v2267_v62 }
 0x1d6   :  { %v1482_v13 = vpop.f32.mrf.mxu0 }
 0x1d7   :  { %v2269_v14 = vpop.f32.mrf.mxu1 }
 0x1d8   :  { %2340 = vst [vmem:[#allocation14_spill] sm:$0xff] %v2269_v14  ;;  %v1483_v40 = vpop.f32.mrf.mxu0 }
 0x1d9   :  { %v2271_v19 = vpop.f32.mrf.mxu1  ;;  %v2344_v21 = vld [vmem:[#allocation13_spill] sm:$0xff] }
 0x1da   :  { %2341 = vst [vmem:[#allocation15_spill] sm:$0xff] %v2271_v19  ;;  %v1475_v19 = vadd.f32 %v1474_v6, %v1473_v3  ;;  %v1549_v3 = vadd.f32 %v2257_v1, %v2255_v63  ;;  %v1555_v6 = vadd.f32 %v2261_v58, %v2259_v4  ;;  %v1561_v22 = vadd.f32 %v2344_v21, %v2265_v10 }
 0x1dc   :  { %v978_v51 = vadd.f32 %v1475_v19, %v2276_v20 }
 0x1de   :  { %v2279_v25 = vpop.f32.mrf.mxu0  ;;  %v1123_v19 = vadd.f32 %v1555_v6, %v978_v51 }
 0x1df   :  { %2342 = vst [vmem:[#allocation16_spill] sm:$0xff] %v2279_v25  ;;  %v2281_v62 = vpop.f32.mrf.mxu1  ;;  %v1469_v25 = vadd.f32 %v1468_v0, %v1467_v61  ;;  %v1484_v61 = vadd.f32 %v1483_v40, %v1482_v13  ;;  %v1546_v0 = vadd.f32 %v2253_v16, %v2251_v35  ;;  %v988_v35 = vadd.f32 %v1481_v36, %v2276_v20 }
 0x1e0   :  { %2343 = vst [vmem:[#allocation17_spill] sm:$0xff] %v2281_v62  ;;  %v1478_v62 = vadd.f32 %v1477_v38, %v1476_v7  ;;  %v1486_v14 = vpop.f32.mrf.mxu0  ;;  %v1098_v38 = vadd.f32 %v1540_v32, %v953_v57 }
 0x1e1   :  { %v2289_v17 = vpop.f32.mrf.mxu1  ;;  %v968_v47 = vadd.f32 %v1469_v25, %v2276_v20  ;;  %v1108_v24 = vadd.f32 %v1546_v0, %v963_v60  ;;  %v993_v16 = vadd.f32 %v1484_v61, %v2276_v20  ;;  %v2345_v25 = vld [vmem:[#allocation14_spill] sm:$0xff]  ;;  %v2346_v30 = vld [vmem:[#allocation15_spill] sm:$0xff]  ;;  %v1133_v23 = vadd.f32 %v1561_v22, %v988_v35 }
 0x1e2   :  { %v983_v53 = vadd.f32 %v1478_v62, %v2276_v20  ;;  %v1564_v33 = vadd.f32 %v2346_v30, %v2345_v25 }
 0x1e3   :  { %v1113_v13 = vadd.f32 %v1549_v3, %v968_v47 }
 0x1e4   :  { %v1128_v40 = vadd.f32 %v1558_v2, %v983_v53  ;;  %v1138_v52 = vadd.f32 %v1564_v33, %v993_v16 }
 0x1e6   :  { %v1488_v48 = vpop.f32.mrf.mxu0  ;;  %v2347_v41 = vld [vmem:[#allocation16_spill] sm:$0xff] }
 0x1e7   :  { %v2299_v54 = vpop.f32.mrf.mxu1  ;;  %v1487_v29 = vadd.f32 %v1486_v14, %v2347_v41  ;;  %v2348_v59 = vld [vmem:[#allocation17_spill] sm:$0xff] }
 0x1e8   :  { %v1489_v55 = vpop.f32.mrf.mxu0  ;;  %v1567_v51 = vadd.f32 %v2289_v17, %v2348_v59 }
 0x1e9   :  { %v1569_v56 = vpop.f32.mrf.mxu1  ;;  %v1490_v34 = vadd.f32 %v1489_v55, %v1488_v48  ;;  %v998_v32 = vadd.f32 %v1487_v29, %v2276_v20 }
 0x1ea   :  { %v1613_v37 = vpop.f32.mrf.mxu0  ;;  %v1570_v53 = vadd.f32 %v1569_v56, %v2299_v54 }
 0x1eb   :  { %v1625_v7 = vpop.f32.mrf.mxu1  ;;  %v1223_v12 = vadd.f32 %v1613_v37, %v1078_v18  ;;  %v1003_v14 = vadd.f32 %v1490_v34, %v2276_v20  ;;  %v1143_v37 = vadd.f32 %v1567_v51, %v998_v32 }
 0x1ec   :  { %v1263_v62 = vadd.f32 %v1625_v7, %v1118_v5  ;;  %v1217_v63 = vpop.f32.mrf.mxu0 }
 0x1ed   :  { %v1257_v1 = vpop.f32.mrf.mxu1  ;;  %v1297_v4 = vmul.f32 0.5, %v1223_v12  ;;  %v1218_v8 = vadd.f32 %v1217_v63, %v1073_v49  ;;  %v1148_v6 = vadd.f32 %v1570_v53, %v1003_v14 }
 0x1ee   :  { %v1305_v58 = vmul.f32 0.5, %v1263_v62  ;;  %v1258_v9 = vadd.f32 %v1257_v1, %v1113_v13  ;;  %v1616_v42 = vpop.f32.mrf.mxu0 }
 0x1ef   :  { %v1628_v43 = vpop.f32.mrf.mxu1  ;;  %1658 = vtanh.f32 %v1297_v4  ;;  %v1296_v46 = vmul.f32 0.5, %v1218_v8  ;;  %v1233_v27 = vadd.f32 %v1616_v42, %v1088_v50 }
 0x1f0   :  { %v1304_v26 = vmul.f32 0.5, %v1258_v9  ;;  %1660 = vtanh.f32 %v1305_v58  ;;  %v1273_v15 = vadd.f32 %v1628_v43, %v1128_v40  ;;  %v1227_v18 = vpop.f32.mrf.mxu0 }
 0x1f1   :  { %v1267_v49 = vpop.f32.mrf.mxu1  ;;  %1662 = vtanh.f32 %v1296_v46  ;;  %v1299_v10 = vmul.f32 0.5, %v1233_v27  ;;  %v1228_v28 = vadd.f32 %v1227_v18, %v1083_v31 }
 0x1f2   :  { %v1268_v57 = vadd.f32 %v1267_v49, %v1123_v19  ;;  %1664 = vtanh.f32 %v1304_v26  ;;  %v1307_v45 = vmul.f32 0.5, %v1273_v15  ;;  %v1619_v48 = vpop.f32.mrf.mxu0 }
 0x1f3   :  { %v1631_v44 = vpop.f32.mrf.mxu1  ;;  %1666 = vtanh.f32 %v1299_v10  ;;  %v1298_v50 = vmul.f32 0.5, %v1228_v28  ;;  %v1243_v47 = vadd.f32 %v1619_v48, %v1098_v38 }
 0x1f4   :  { %v1306_v60 = vmul.f32 0.5, %v1268_v57  ;;  %1668 = vtanh.f32 %v1307_v45  ;;  %v1283_v31 = vadd.f32 %v1631_v44, %v1138_v52  ;;  %v1237_v36 = vpop.f32.mrf.mxu0 }
 0x1f5   :  { %v1277_v61 = vpop.f32.mrf.mxu1  ;;  %1670 = vtanh.f32 %v1298_v50  ;;  %v1301_v55 = vmul.f32 0.5, %v1243_v47  ;;  %v1238_v20 = vadd.f32 %v1237_v36, %v1093_v11 }
 0x1f6   :  { %v1278_v0 = vadd.f32 %v1277_v61, %v1133_v23  ;;  %1672 = vtanh.f32 %v1306_v60  ;;  %v1309_v3 = vmul.f32 0.5, %v1283_v31  ;;  %v1622_v5 = vpop.f32.mrf.mxu0 }
 0x1f7   :  { %v1634_v2 = vpop.f32.mrf.mxu1  ;;  %1674 = vtanh.f32 %v1301_v55  ;;  %v1300_v7 = vmul.f32 0.5, %v1238_v20  ;;  %v1253_v17 = vadd.f32 %v1622_v5, %v1108_v24 }
 0x1f8   :  { %v1308_v38 = vmul.f32 0.5, %v1278_v0  ;;  %1676 = vtanh.f32 %v1309_v3  ;;  %v1293_v54 = vadd.f32 %v1634_v2, %v1148_v6  ;;  %v1247_v56 = vpop.f32.mrf.mxu0 }
 0x1f9   :  { %v1287_v12 = vpop.f32.mrf.mxu1  ;;  %1678 = vtanh.f32 %v1300_v7  ;;  %v1303_v62 = vmul.f32 0.5, %v1253_v17  ;;  %v1248_v13 = vadd.f32 %v1247_v56, %v2314_v39 }
 0x1fa   :  { %v1288_v11 = vadd.f32 %v1287_v12, %v1143_v37  ;;  %1680 = vtanh.f32 %v1308_v38  ;;  %v1311_v35 = vmul.f32 0.5, %v1293_v54 }
 0x1fb   :  { %1682 = vtanh.f32 %v1303_v62  ;;  %v1302_v16 = vmul.f32 0.5, %v1248_v13 }
 0x1fc   :  { %v1310_v63 = vmul.f32 0.5, %v1288_v11  ;;  %v1659_v1 = vpop.eup %1658  ;;  %1684 = vtanh.f32 %v1311_v35 }
 0x1fd   :  { %v1661_v40 = vpop.eup %1660  ;;  %v1329_v19 = vmul.f32 0.5, %v1659_v1  ;;  %1686 = vtanh.f32 %v1302_v16 }
 0x1fe   :  { %v1663_v24 = vpop.eup %1662  ;;  %v1337_v4 = vmul.f32 0.5, %v1661_v40  ;;  %1688 = vtanh.f32 %v1310_v63 }
 0x1ff   :  { %v1665_v58 = vpop.eup %1664  ;;  %v1345_v8 = vadd.f32 0.5, %v1329_v19  ;;  %v1328_v9 = vmul.f32 0.5, %v1663_v24 }
 0x200   :  { %v1667_v21 = vpop.eup %1666  ;;  %v1353_v22 = vadd.f32 0.5, %v1337_v4  ;;  %v1336_v39 = vmul.f32 0.5, %v1665_v58 }
 0x201   :  { %v1669_v25 = vpop.eup %1668  ;;  %1361 = vst [vmem:[#allocation9 + $0x8] sm:$0xff] %v1345_v8  ;;  %v1344_v30 = vadd.f32 0.5, %v1328_v9  ;;  %v1331_v33 = vmul.f32 0.5, %v1667_v21 }
 0x202   :  { %v1671_v41 = vpop.eup %1670  ;;  %1369 = vst [vmem:[#allocation9 + $0x48] sm:$0xff] %v1353_v22  ;;  %v1352_v29 = vadd.f32 0.5, %v1336_v39  ;;  %v1339_v34 = vmul.f32 0.5, %v1669_v25 }
 0x203   :  { %v1673_v42 = vpop.eup %1672  ;;  %1360 = vst [vmem:[#allocation9] sm:$0xff] %v1344_v30  ;;  %v1347_v43 = vadd.f32 0.5, %v1331_v33  ;;  %v1330_v46 = vmul.f32 0.5, %v1671_v41 }
 0x204   :  { %v1675_v26 = vpop.eup %1674  ;;  %1368 = vst [vmem:[#allocation9 + $0x40] sm:$0xff] %v1352_v29  ;;  %v1355_v27 = vadd.f32 0.5, %v1339_v34  ;;  %v1338_v15 = vmul.f32 0.5, %v1673_v42 }
 0x205   :  { %v1677_v18 = vpop.eup %1676  ;;  %1363 = vst [vmem:[#allocation9 + $0x18] sm:$0xff] %v1347_v43  ;;  %v1346_v49 = vadd.f32 0.5, %v1330_v46  ;;  %v1333_v52 = vmul.f32 0.5, %v1675_v26 }
 0x206   :  { %v1679_v23 = vpop.eup %1678  ;;  %1371 = vst [vmem:[#allocation9 + $0x58] sm:$0xff] %v1355_v27  ;;  %v1354_v10 = vadd.f32 0.5, %v1338_v15  ;;  %v1341_v28 = vmul.f32 0.5, %v1677_v18 }
 0x207   :  { %v1681_v57 = vpop.eup %1680  ;;  %1362 = vst [vmem:[#allocation9 + $0x10] sm:$0xff] %v1346_v49  ;;  %v1349_v32 = vadd.f32 0.5, %v1333_v52  ;;  %v1332_v14 = vmul.f32 0.5, %v1679_v23 }
 0x208   :  { %v1683_v45 = vpop.eup %1682  ;;  %1370 = vst [vmem:[#allocation9 + $0x50] sm:$0xff] %v1354_v10  ;;  %v1357_v48 = vadd.f32 0.5, %v1341_v28  ;;  %v1340_v44 = vmul.f32 0.5, %v1681_v57 }
 0x209   :  { %v1685_v50 = vpop.eup %1684  ;;  %1365 = vst [vmem:[#allocation9 + $0x28] sm:$0xff] %v1349_v32  ;;  %v1348_v60 = vadd.f32 0.5, %v1332_v14  ;;  %v1335_v47 = vmul.f32 0.5, %v1683_v45 }
 0x20a   :  { %v1687_v59 = vpop.eup %1686  ;;  %1373 = vst [vmem:[#allocation9 + $0x68] sm:$0xff] %v1357_v48  ;;  %v1356_v51 = vadd.f32 0.5, %v1340_v44  ;;  %v1343_v53 = vmul.f32 0.5, %v1685_v50 }
 0x20b   :  { %v1689_v31 = vpop.eup %1688  ;;  %1364 = vst [vmem:[#allocation9 + $0x20] sm:$0xff] %v1348_v60  ;;  %v1351_v36 = vadd.f32 0.5, %v1335_v47  ;;  %v1334_v61 = vmul.f32 0.5, %v1687_v59 }
 0x20c   :  { %1372 = vst [vmem:[#allocation9 + $0x60] sm:$0xff] %v1356_v51  ;;  %v1359_v55 = vadd.f32 0.5, %v1343_v53  ;;  %v1342_v20 = vmul.f32 0.5, %v1689_v31 }
 0x20d   :  { %1367 = vst [vmem:[#allocation9 + $0x38] sm:$0xff] %v1351_v36  ;;  %v1350_v0 = vadd.f32 0.5, %v1334_v61 }
 0x20e   :  { %1375 = vst [vmem:[#allocation9 + $0x78] sm:$0xff] %v1359_v55  ;;  %v1358_v3 = vadd.f32 0.5, %v1342_v20 }
 0x20f   :  { %1366 = vst [vmem:[#allocation9 + $0x30] sm:$0xff] %v1350_v0 }
 0x210   :  { %1374 = vst [vmem:[#allocation9 + $0x70] sm:$0xff] %v1358_v3 }
 0x211   :  { %1741 = shalt.err (!%p1738_p0)
}
 0x212   :  { %1387 = dma.vmem_to_hbm [thread:$0]  %s1382_s25, 2048, %s2338_s3, [#allocation6], %s1757_s15, %s1757_s15, %s1758_s16  }
 0x213   :  { %1754 = dma.done.wait [#allocation6], 2048  }
 0x214   :  { %1755 = vsyncadd [#allocation6], 4294965248 }
 0x215   :  { %1391 = vsyncpa [#allocation5], 1 }
 0x216   :  { %1392 = vsyncpa [#allocation8], 1 }
 0x217   :  { %1393 = vsyncpa [#allocation6], 1 }

</bundles_post_ra>
